<compile_context>
chip_gen: v7x
topology: tpu7x:2x2x1
jax: 0.10.0
libtpu: 0.0.40
codegen_flags: <defaults>
</compile_context>

<pallas_src>
import functools

import jax
import jax.numpy as jnp
from jax.experimental import pallas as pl
from jax.experimental.pallas import tpu as pltpu

NEGINF = -1000000.0
LN_EPS = 1e-5


def _vmem_limit_bytes():
    """VMEM limit with headroom: ~54 MiB on 64 MiB v7x, capped at 112 MiB on 128 MiB parts."""
    cap = 128 * 1024 * 1024
    try:
        info = pltpu.get_tpu_info()
        cap = int(getattr(info, "vmem_capacity_bytes", cap))
    except Exception:
        pass
    return min(int(cap * 0.85), 112 * 1024 * 1024)


def _choose_tile(n, target, mult=128):
    """Largest tile <= target that divides n and is a multiple of `mult`, else n (full)."""
    if n <= target:
        return n
    t = (target // mult) * mult
    while t >= mult:
        if n % t == 0:
            return t
        t -= mult
    return n


# ---------------------------------------------------------------------------
# Kernel 1 (fused): wide multi-head attention + Wz projection + residual + LN1
#   K_h = Xkv Wk_h, V_h = Xkv Wv_h          (cached in VMEM, once per batch elem)
#   Q_h = Xq (Wq_h / sqrt(E))
#   S_h = Q_h K_h^T + bias ; P_h = softmax(S_h) ; acc += (P_h V_h) Wz_h
#   y = LN( acc + bz + Xq )
# ---------------------------------------------------------------------------
def _attn_proj_ln_kernel(num_heads, q_tile, return_attn,
                         x_ref, wq_ref, wk_ref, wv_ref, wz_ref, bz_ref,
                         g_ref, b_ref, bias_ref, *refs):
    if return_attn:
        y_ref, attn_ref = refs[0], refs[1]
        k_sc, v_sc = refs[2], refs[3]
    else:
        y_ref, attn_ref = refs[0], None
        k_sc, v_sc = refs[1], refs[2]

    e = x_ref.shape[-1]
    qi = pl.program_id(1)

    # ---- one-time K/V projection per batch element, cached as bf16 (H, S, E) ----
    @pl.when(qi == 0)
    def _():
        x_kv = x_ref[0].astype(jnp.bfloat16)                       # (S, E)
        for h in range(num_heads):
            k_sc[h] = jnp.dot(x_kv, wk_ref[h],
                              preferred_element_type=jnp.float32).astype(jnp.bfloat16)
            v_sc[h] = jnp.dot(x_kv, wv_ref[h],
                              preferred_element_type=jnp.float32).astype(jnp.bfloat16)

    # Query / residual rows sliced from the resident full-S block (no extra DMA).
    q_start = pl.multiple_of(qi * q_tile, q_tile)
    x_q = x_ref[0, pl.ds(q_start, q_tile), :]                      # (TQ, E) f32 residual
    x_q_bf = x_q.astype(jnp.bfloat16)
    bias = bias_ref[0].astype(jnp.float32)                         # (TQ, S) additive mask

    acc = jnp.zeros((q_tile, e), jnp.float32)
    for h in range(num_heads):                                     # static unrolled head loop
        # 1/sqrt(E) softmax scale is folded into wq by the wrapper.
        q_h = jnp.dot(x_q_bf, wq_ref[h], preferred_element_type=jnp.float32)   # (TQ, E)
        s = jax.lax.dot_general(                                    # contract last dims (no .T)
            q_h.astype(jnp.bfloat16), k_sc[h],
            (((1,), (1,)), ((), ())),
            preferred_element_type=jnp.float32) + bias              # (TQ, S)
        s_max = jnp.max(s, axis=-1, keepdims=True)
        ex = jnp.exp(s - s_max)
        p = ex * pl.reciprocal(jnp.sum(ex, axis=-1, keepdims=True), approx=True)
        if return_attn:
            attn_ref[0, h] = p.astype(attn_ref.dtype)
        z_h = jnp.dot(p.astype(jnp.bfloat16), v_sc[h],
                      preferred_element_type=jnp.float32)           # (TQ, E)
        acc = acc + jnp.dot(z_h.astype(jnp.bfloat16), wz_ref[h],
                            preferred_element_type=jnp.float32)     # per-head Wz accumulation

    y = acc + bz_ref[...] + x_q                                     # Wz bias + residual
    mu = jnp.mean(y, axis=-1, keepdims=True)
    var = jnp.mean((y - mu) * (y - mu), axis=-1, keepdims=True)
    yn = (y - mu) * jax.lax.rsqrt(var + LN_EPS)
    y_ref[0] = yn * g_ref[...] + b_ref[...]


def attention_block(x, wq, wk, wv, wz, bz, ln_g, ln_b, mask_bias,
                    *, num_heads, return_attn=False, q_tile=256):
    """x: (B,S,E) f32; wq/wk/wv/wz: (H,E,E) bf16 (scale folded into wq); mask_bias: (B,S,S) bf16."""
    B, S, E = x.shape
    TQ = _choose_tile(S, q_tile)
    NQ = S // TQ

    out_shapes = [jax.ShapeDtypeStruct((B, S, E), jnp.float32)]
    out_specs = [pl.BlockSpec((1, TQ, E), lambda b, qi: (b, qi, 0))]
    if return_attn:
        # attention probabilities stored in bf16 to halve HBM store traffic
        out_shapes.append(jax.ShapeDtypeStruct((B, num_heads, S, S), jnp.bfloat16))
        out_specs.append(pl.BlockSpec((1, num_heads, TQ, S),
                                      lambda b, qi: (b, 0, qi, 0)))

    flops = (8 * B * num_heads * S * E * E      # Q/K/V projections + Wz (KV now once per b)
             + 4 * B * num_heads * S * S * E)   # QK^T and PV
    bytes_acc = (8 * B * S * E                  # x read + y write (f32)
                 + 2 * 4 * num_heads * E * E    # wq/wk/wv/wz (bf16)
                 + 16 * E                       # bz, gamma, beta (f32)
                 + 2 * B * S * S                # additive mask bias (bf16)
                 + (2 * B * num_heads * S * S if return_attn else 0))

    kernel = functools.partial(_attn_proj_ln_kernel, num_heads, TQ, return_attn)
    return pl.pallas_call(
        kernel,
        out_shape=tuple(out_shapes) if return_attn else out_shapes[0],
        grid_spec=pltpu.PrefetchScalarGridSpec(
            num_scalar_prefetch=0,
            grid=(B, NQ),
            in_specs=[
                pl.BlockSpec((1, S, E), lambda b, qi: (b, 0, 0)),          # resident full-S x
                pl.BlockSpec((num_heads, E, E), lambda b, qi: (0, 0, 0)),  # wq (scaled, bf16)
                pl.BlockSpec((num_heads, E, E), lambda b, qi: (0, 0, 0)),  # wk (bf16)
                pl.BlockSpec((num_heads, E, E), lambda b, qi: (0, 0, 0)),  # wv (bf16)
                pl.BlockSpec((num_heads, E, E), lambda b, qi: (0, 0, 0)),  # wz split per head
                pl.BlockSpec((1, E), lambda b, qi: (0, 0)),                # bz
                pl.BlockSpec((1, E), lambda b, qi: (0, 0)),                # ln1 gamma
                pl.BlockSpec((1, E), lambda b, qi: (0, 0)),                # ln1 beta
                pl.BlockSpec((1, TQ, S), lambda b, qi: (b, qi, 0)),        # additive mask bias
            ],
            out_specs=tuple(out_specs) if return_attn else out_specs[0],
            scratch_shapes=[pltpu.VMEM((num_heads, S, E), jnp.bfloat16),   # K cache
                            pltpu.VMEM((num_heads, S, E), jnp.bfloat16)],  # V cache
        ),
        compiler_params=pltpu.CompilerParams(
            dimension_semantics=("parallel", "arbitrary"),
            vmem_limit_bytes=_vmem_limit_bytes()),
        cost_estimate=pl.CostEstimate(
            flops=int(flops),
            transcendentals=int(B * num_heads * S * S + B * S),
            bytes_accessed=int(bytes_acc)),
    )(x, wq, wk, wv, wz, bz, ln_g, ln_b, mask_bias)


# ---------------------------------------------------------------------------
# Kernel 2: MLP (Linear -> ReLU -> Linear) + residual + LayerNorm2.
# Grid (B, S-tiles, F-tiles); second matmul accumulated in VMEM, LN finalized
# on the last F tile.
# ---------------------------------------------------------------------------
def _mlp_ln_kernel(z_ref, w1_ref, b1_ref, w2_ref, b2_ref, g_ref, b_ref,
                   out_ref, acc_ref):
    fi = pl.program_id(2)

    @pl.when(fi == 0)
    def _():
        acc_ref[...] = jnp.zeros_like(acc_ref)

    z = z_ref[0]                                                     # (TS, E) f32 residual
    h = jnp.dot(z.astype(jnp.bfloat16), w1_ref[...],
                preferred_element_type=jnp.float32) + b1_ref[...]
    h = jnp.maximum(h, 0.0)                                          # ReLU
    acc_ref[...] += jnp.dot(h.astype(jnp.bfloat16), w2_ref[...],
                            preferred_element_type=jnp.float32)

    @pl.when(fi == pl.num_programs(2) - 1)
    def _():
        y = acc_ref[...] + b2_ref[...] + z
        mu = jnp.mean(y, axis=-1, keepdims=True)
        var = jnp.mean((y - mu) * (y - mu), axis=-1, keepdims=True)
        yn = (y - mu) * jax.lax.rsqrt(var + LN_EPS)
        out_ref[0] = yn * g_ref[...] + b_ref[...]


def mlp_residual_ln(z, w1, b1, w2, b2, gamma, beta, *, s_tile=512, f_tile=1024):
    B, S, E = z.shape
    F = w1.shape[-1]
    TS = _choose_tile(S, s_tile)
    TF = _choose_tile(F, f_tile)
    NS, NF = S // TS, F // TF
    return pl.pallas_call(
        _mlp_ln_kernel,
        out_shape=jax.ShapeDtypeStruct((B, S, E), jnp.float32),
        grid_spec=pltpu.PrefetchScalarGridSpec(
            num_scalar_prefetch=0,
            grid=(B, NS, NF),
            in_specs=[
                pl.BlockSpec((1, TS, E), lambda b, si, fi: (b, si, 0)),
                pl.BlockSpec((E, TF), lambda b, si, fi: (0, fi)),     # w1 (bf16)
                pl.BlockSpec((1, TF), lambda b, si, fi: (0, fi)),     # b1
                pl.BlockSpec((TF, E), lambda b, si, fi: (fi, 0)),     # w2 (bf16)
                pl.BlockSpec((1, E), lambda b, si, fi: (0, 0)),       # b2
                pl.BlockSpec((1, E), lambda b, si, fi: (0, 0)),       # ln2 gamma
                pl.BlockSpec((1, E), lambda b, si, fi: (0, 0)),       # ln2 beta
            ],
            out_specs=pl.BlockSpec((1, TS, E), lambda b, si, fi: (b, si, 0)),
            scratch_shapes=[pltpu.VMEM((TS, E), jnp.float32)],
        ),
        compiler_params=pltpu.CompilerParams(
            dimension_semantics=("parallel", "parallel", "arbitrary"),
            vmem_limit_bytes=_vmem_limit_bytes()),
        cost_estimate=pl.CostEstimate(
            flops=int(4 * B * S * E * F),
            transcendentals=int(B * S),
            bytes_accessed=int(8 * B * S * E + 4 * E * F + 4 * F + 12 * E)),
    )(z, w1, b1, w2, b2, gamma, beta)


# ---------------------------------------------------------------------------
# EncoderBlock forward (Wide multihead, ReLU nonlinearity, dropout = eval/identity)
# ---------------------------------------------------------------------------
def encoder_block_forward(params, x, mask=None, *, return_attn=True,
                          q_tile=256, s_tile=512, f_tile=1024):
    B, S, E = x.shape
    H = params["wq"].shape[0]

    # One-time weight packing: fold the 1/sqrt(E) softmax scale into wq, split wz
    # per head, and pre-cast all matmul weights to bf16 (MXU-native).
    scale = 1.0 / float(E) ** 0.5
    wq_b = (params["wq"] * scale).astype(jnp.bfloat16)               # (H, E, E)
    wk_b = params["wk"].astype(jnp.bfloat16)
    wv_b = params["wv"].astype(jnp.bfloat16)
    wz_b = params["wz"].reshape(H, E, E).astype(jnp.bfloat16)        # wz[h] = Wz rows of head h
    w1_b = params["w1"].astype(jnp.bfloat16)
    w2_b = params["w2"].astype(jnp.bfloat16)

    # Additive mask bias (0 / NEGINF) in bf16: halves S^2 HBM traffic and replaces
    # compare+select with a single add. Matches the module's requirement that each
    # row has at least one unmasked entry.
    if mask is None:
        mask_bias = jnp.zeros((B, S, S), jnp.bfloat16)
    else:
        mask_bias = jnp.where(mask == 0, NEGINF, 0.0).astype(jnp.bfloat16)

    outs = attention_block(x, wq_b, wk_b, wv_b, wz_b, params["bz"],
                           params["ln1_g"], params["ln1_b"], mask_bias,
                           num_heads=H, return_attn=return_attn, q_tile=q_tile)
    if return_attn:
        z1, attn = outs
    else:
        z1, attn = outs, None

    # TODO(synk): dropout omitted (eval mode) to keep the forward deterministic.
    z2 = mlp_residual_ln(z1, w1_b, params["b1"], w2_b, params["b2"],
                         params["ln2_g"], params["ln2_b"],
                         s_tile=s_tile, f_tile=f_tile)               # (B, S, E)

    attn_dict = ({f"h{h}": attn[:, h].astype(jnp.float32) for h in range(H)}
                 if return_attn else None)
    return z2, attn_dict


# ---------------------------------------------------------------------------
# Pure-JAX reference for a correctness check (mirrors the PyTorch module, f32).
# ---------------------------------------------------------------------------
def encoder_block_reference(params, x, mask=None):
    B, S, E = x.shape
    H = params["wq"].shape[0]
    if mask is None:
        mask = jnp.ones((B, S, S), jnp.float32)
    scale = 1.0 / (E ** 0.25)
    outs, attns = [], []
    for h in range(H):
        q = (x @ params["wq"][h]) * scale
        k = (x @ params["wk"][h]) * scale
        v = x @ params["wv"][h]
        s = jnp.einsum("bqe,bke->bqk", q, k)
        s = jnp.where(mask == 0, NEGINF, s)
        p = jax.nn.softmax(s, axis=-1)
        outs.append(jnp.einsum("bqk,bke->bqe", p, v))
        attns.append(p)
    z_cat = jnp.concatenate(outs, axis=-1)
    y = z_cat @ params["wz"] + params["bz"][0] + x
    mu = jnp.mean(y, -1, keepdims=True)
    var = jnp.mean((y - mu) ** 2, -1, keepdims=True)
    z1 = (y - mu) / jnp.sqrt(var + LN_EPS) * params["ln1_g"][0] + params["ln1_b"][0]
    hdn = jnp.maximum(z1 @ params["w1"] + params["b1"][0], 0.0)
    y2 = hdn @ params["w2"] + params["b2"][0] + z1
    mu2 = jnp.mean(y2, -1, keepdims=True)
    var2 = jnp.mean((y2 - mu2) ** 2, -1, keepdims=True)
    z2 = (y2 - mu2) / jnp.sqrt(var2 + LN_EPS) * params["ln2_g"][0] + params["ln2_b"][0]
    return z2, attns


def init_params(key, E, H, mlp_factor):
    F = E * mlp_factor
    ks = jax.random.split(key, 8)
    return dict(
        wq=0.05 * jax.random.normal(ks[0], (H, E, E), jnp.float32),
        wk=0.05 * jax.random.normal(ks[1], (H, E, E), jnp.float32),
        wv=0.05 * jax.random.normal(ks[2], (H, E, E), jnp.float32),
        wz=0.05 * jax.random.normal(ks[3], (H * E, E), jnp.float32),
        bz=0.01 * jax.random.normal(ks[4], (1, E), jnp.float32),
        w1=0.05 * jax.random.normal(ks[5], (E, F), jnp.float32),
        b1=0.01 * jax.random.normal(ks[6], (1, F), jnp.float32),
        w2=0.05 * jax.random.normal(ks[7], (F, E), jnp.float32),
        b2=jnp.zeros((1, E), jnp.float32),
        ln1_g=jnp.ones((1, E), jnp.float32),
        ln1_b=jnp.zeros((1, E), jnp.float32),
        ln2_g=jnp.ones((1, E), jnp.float32),
        ln2_b=jnp.zeros((1, E), jnp.float32),
    )


if __name__ == "__main__":
    B, S, E, H, MLP_FACTOR = 2, 8, 32, 4, 2

    key = jax.random.PRNGKey(0)
    kx, km, kp = jax.random.split(key, 3)
    x = jax.random.normal(kx, (B, S, E), jnp.float32)
    # 0/1 mask with at least one 1 per row (diagonal forced on)
    mask = (jax.random.uniform(km, (B, S, S)) > 0.3).astype(jnp.float32)
    mask = jnp.maximum(mask, jnp.eye(S, dtype=jnp.float32)[None])

    params = init_params(kp, E, H, MLP_FACTOR)

    z, attn_dict = encoder_block_forward(params, x, mask, return_attn=True)
    z = jax.block_until_ready(z)

    # correctness check against pure-JAX f32 reference (tolerance covers the bf16
    # MXU operands, bf16 attention-prob storage, and the EUP approx reciprocal)
    z_ref, attn_ref = encoder_block_reference(params, x, mask)
    assert jnp.allclose(z, z_ref, atol=2.5e-2, rtol=2.5e-2), "output mismatch"
    for h in range(H):
        assert jnp.allclose(attn_dict[f"h{h}"], attn_ref[h], atol=1.5e-2, rtol=1.5e-2), \
            f"attn mismatch head {h}"

    print("KERNEL_OK")
</pallas_src>

<mosaic_0001>
module attributes {stable_mosaic.version = 11 : i64} {
  func.func @_attn_proj_ln_kernel(%arg0: i32, %arg1: i32, %arg2: memref<1x8x32xf32, #tpu.memory_space<vmem>>, %arg3: memref<4x32x32xbf16, #tpu.memory_space<vmem>>, %arg4: memref<4x32x32xbf16, #tpu.memory_space<vmem>>, %arg5: memref<4x32x32xbf16, #tpu.memory_space<vmem>>, %arg6: memref<4x32x32xbf16, #tpu.memory_space<vmem>>, %arg7: memref<1x32xf32, #tpu.memory_space<vmem>>, %arg8: memref<1x32xf32, #tpu.memory_space<vmem>>, %arg9: memref<1x32xf32, #tpu.memory_space<vmem>>, %arg10: memref<1x8x8xbf16, #tpu.memory_space<vmem>>, %arg11: memref<1x8x32xf32, #tpu.memory_space<vmem>>, %arg12: memref<1x4x8x8xbf16, #tpu.memory_space<vmem>>, %arg13: memref<4x8x32xbf16, #tpu.memory_space<vmem>>, %arg14: memref<4x8x32xbf16, #tpu.memory_space<vmem>>) attributes {dimension_semantics = [#tpu.dimension_semantics<parallel>, #tpu.dimension_semantics<arbitrary>], iteration_bounds = array<i64: 2, 1>, scalar_prefetch = 0 : i64, scratch_operands = 2 : i64, tpu.core_type = #tpu.core_type<tc>, window_params = [{transform_indices = @transform_0, window_bounds = array<i64: 1, 8, 32>}, {pipeline_mode = #tpu.pipeline_mode<synchronous>, transform_indices = @transform_1, window_bounds = array<i64: 4, 32, 32>}, {pipeline_mode = #tpu.pipeline_mode<synchronous>, transform_indices = @transform_2, window_bounds = array<i64: 4, 32, 32>}, {pipeline_mode = #tpu.pipeline_mode<synchronous>, transform_indices = @transform_3, window_bounds = array<i64: 4, 32, 32>}, {pipeline_mode = #tpu.pipeline_mode<synchronous>, transform_indices = @transform_4, window_bounds = array<i64: 4, 32, 32>}, {pipeline_mode = #tpu.pipeline_mode<synchronous>, transform_indices = @transform_5, window_bounds = array<i64: 1, 32>}, {pipeline_mode = #tpu.pipeline_mode<synchronous>, transform_indices = @transform_6, window_bounds = array<i64: 1, 32>}, {pipeline_mode = #tpu.pipeline_mode<synchronous>, transform_indices = @transform_7, window_bounds = array<i64: 1, 32>}, {transform_indices = @transform_8, window_bounds = array<i64: 1, 8, 8>}, {transform_indices = @transform_9, window_bounds = array<i64: 1, 8, 32>}, {transform_indices = @transform_10, window_bounds = array<i64: 1, 4, 8, 8>}]} {
    %c0_i32 = arith.constant 0 : i32
    %0 = arith.cmpi eq, %arg1, %c0_i32 : i32
    %1 = arith.extui %0 : i1 to i32
    %c0_i32_0 = arith.constant 0 : i32
    %2 = arith.cmpi ne, %1, %c0_i32_0 : i32
    scf.if %2 {
      %c0_104 = arith.constant 0 : index
      %c0_105 = arith.constant 0 : index
      %c0_106 = arith.constant 0 : index
      %170 = vector.load %arg2[%c0_104, %c0_105, %c0_106] : memref<1x8x32xf32, #tpu.memory_space<vmem>>, vector<1x8x32xf32>
      %171 = vector.shape_cast %170 : vector<1x8x32xf32> to vector<8x32xf32>
      %172 = arith.truncf %171 : vector<8x32xf32> to vector<8x32xbf16>
      %c0_107 = arith.constant 0 : index
      %c0_108 = arith.constant 0 : index
      %c0_109 = arith.constant 0 : index
      %173 = vector.load %arg4[%c0_107, %c0_108, %c0_109] : memref<4x32x32xbf16, #tpu.memory_space<vmem>>, vector<1x32x32xbf16>
      %174 = vector.shape_cast %173 : vector<1x32x32xbf16> to vector<32x32xbf16>
      %cst_110 = arith.constant dense<0.000000e+00> : vector<8x32xf32>
      %175 = tpu.matmul %172, %174, %cst_110 {dimension_numbers = #tpu.dot_dimension_numbers<[1], [0], [0], [1], [0, 0, 1, 1], [], []>} : vector<8x32xbf16>, vector<32x32xbf16>, vector<8x32xf32> -> vector<8x32xf32>
      %176 = arith.truncf %175 : vector<8x32xf32> to vector<8x32xbf16>
      %c0_111 = arith.constant 0 : index
      %c0_112 = arith.constant 0 : index
      %c0_113 = arith.constant 0 : index
      %177 = vector.load %arg13[%c0_111, %c0_112, %c0_113] : memref<4x8x32xbf16, #tpu.memory_space<vmem>>, vector<1x8x32xbf16>
      %178 = vector.shape_cast %177 : vector<1x8x32xbf16> to vector<8x32xbf16>
      %179 = vector.shape_cast %176 : vector<8x32xbf16> to vector<1x8x32xbf16>
      tpu.vector_store %arg13[%c0_111, %c0_112, %c0_113], %179 {strides = array<i32>} : memref<4x8x32xbf16, #tpu.memory_space<vmem>>, vector<1x8x32xbf16>,
      %c0_114 = arith.constant 0 : index
      %c0_115 = arith.constant 0 : index
      %c0_116 = arith.constant 0 : index
      %180 = vector.load %arg5[%c0_114, %c0_115, %c0_116] : memref<4x32x32xbf16, #tpu.memory_space<vmem>>, vector<1x32x32xbf16>
      %181 = vector.shape_cast %180 : vector<1x32x32xbf16> to vector<32x32xbf16>
      %cst_117 = arith.constant dense<0.000000e+00> : vector<8x32xf32>
      %182 = tpu.matmul %172, %181, %cst_117 {dimension_numbers = #tpu.dot_dimension_numbers<[1], [0], [0], [1], [0, 0, 1, 1], [], []>} : vector<8x32xbf16>, vector<32x32xbf16>, vector<8x32xf32> -> vector<8x32xf32>
      %183 = arith.truncf %182 : vector<8x32xf32> to vector<8x32xbf16>
      %c0_118 = arith.constant 0 : index
      %c0_119 = arith.constant 0 : index
      %c0_120 = arith.constant 0 : index
      %184 = vector.load %arg14[%c0_118, %c0_119, %c0_120] : memref<4x8x32xbf16, #tpu.memory_space<vmem>>, vector<1x8x32xbf16>
      %185 = vector.shape_cast %184 : vector<1x8x32xbf16> to vector<8x32xbf16>
      %186 = vector.shape_cast %183 : vector<8x32xbf16> to vector<1x8x32xbf16>
      tpu.vector_store %arg14[%c0_118, %c0_119, %c0_120], %186 {strides = array<i32>} : memref<4x8x32xbf16, #tpu.memory_space<vmem>>, vector<1x8x32xbf16>,
      %c1_121 = arith.constant 1 : index
      %c0_122 = arith.constant 0 : index
      %c0_123 = arith.constant 0 : index
      %187 = vector.load %arg4[%c1_121, %c0_122, %c0_123] : memref<4x32x32xbf16, #tpu.memory_space<vmem>>, vector<1x32x32xbf16>
      %188 = vector.shape_cast %187 : vector<1x32x32xbf16> to vector<32x32xbf16>
      %cst_124 = arith.constant dense<0.000000e+00> : vector<8x32xf32>
      %189 = tpu.matmul %172, %188, %cst_124 {dimension_numbers = #tpu.dot_dimension_numbers<[1], [0], [0], [1], [0, 0, 1, 1], [], []>} : vector<8x32xbf16>, vector<32x32xbf16>, vector<8x32xf32> -> vector<8x32xf32>
      %190 = arith.truncf %189 : vector<8x32xf32> to vector<8x32xbf16>
      %c1_125 = arith.constant 1 : index
      %c0_126 = arith.constant 0 : index
      %c0_127 = arith.constant 0 : index
      %191 = vector.load %arg13[%c1_125, %c0_126, %c0_127] : memref<4x8x32xbf16, #tpu.memory_space<vmem>>, vector<1x8x32xbf16>
      %192 = vector.shape_cast %191 : vector<1x8x32xbf16> to vector<8x32xbf16>
      %193 = vector.shape_cast %190 : vector<8x32xbf16> to vector<1x8x32xbf16>
      tpu.vector_store %arg13[%c1_125, %c0_126, %c0_127], %193 {strides = array<i32>} : memref<4x8x32xbf16, #tpu.memory_space<vmem>>, vector<1x8x32xbf16>,
      %c1_128 = arith.constant 1 : index
      %c0_129 = arith.constant 0 : index
      %c0_130 = arith.constant 0 : index
      %194 = vector.load %arg5[%c1_128, %c0_129, %c0_130] : memref<4x32x32xbf16, #tpu.memory_space<vmem>>, vector<1x32x32xbf16>
      %195 = vector.shape_cast %194 : vector<1x32x32xbf16> to vector<32x32xbf16>
      %cst_131 = arith.constant dense<0.000000e+00> : vector<8x32xf32>
      %196 = tpu.matmul %172, %195, %cst_131 {dimension_numbers = #tpu.dot_dimension_numbers<[1], [0], [0], [1], [0, 0, 1, 1], [], []>} : vector<8x32xbf16>, vector<32x32xbf16>, vector<8x32xf32> -> vector<8x32xf32>
      %197 = arith.truncf %196 : vector<8x32xf32> to vector<8x32xbf16>
      %c1_132 = arith.constant 1 : index
      %c0_133 = arith.constant 0 : index
      %c0_134 = arith.constant 0 : index
      %198 = vector.load %arg14[%c1_132, %c0_133, %c0_134] : memref<4x8x32xbf16, #tpu.memory_space<vmem>>, vector<1x8x32xbf16>
      %199 = vector.shape_cast %198 : vector<1x8x32xbf16> to vector<8x32xbf16>
      %200 = vector.shape_cast %197 : vector<8x32xbf16> to vector<1x8x32xbf16>
      tpu.vector_store %arg14[%c1_132, %c0_133, %c0_134], %200 {strides = array<i32>} : memref<4x8x32xbf16, #tpu.memory_space<vmem>>, vector<1x8x32xbf16>,
      %c2_135 = arith.constant 2 : index
      %c0_136 = arith.constant 0 : index
      %c0_137 = arith.constant 0 : index
      %201 = vector.load %arg4[%c2_135, %c0_136, %c0_137] : memref<4x32x32xbf16, #tpu.memory_space<vmem>>, vector<1x32x32xbf16>
      %202 = vector.shape_cast %201 : vector<1x32x32xbf16> to vector<32x32xbf16>
      %cst_138 = arith.constant dense<0.000000e+00> : vector<8x32xf32>
      %203 = tpu.matmul %172, %202, %cst_138 {dimension_numbers = #tpu.dot_dimension_numbers<[1], [0], [0], [1], [0, 0, 1, 1], [], []>} : vector<8x32xbf16>, vector<32x32xbf16>, vector<8x32xf32> -> vector<8x32xf32>
      %204 = arith.truncf %203 : vector<8x32xf32> to vector<8x32xbf16>
      %c2_139 = arith.constant 2 : index
      %c0_140 = arith.constant 0 : index
      %c0_141 = arith.constant 0 : index
      %205 = vector.load %arg13[%c2_139, %c0_140, %c0_141] : memref<4x8x32xbf16, #tpu.memory_space<vmem>>, vector<1x8x32xbf16>
      %206 = vector.shape_cast %205 : vector<1x8x32xbf16> to vector<8x32xbf16>
      %207 = vector.shape_cast %204 : vector<8x32xbf16> to vector<1x8x32xbf16>
      tpu.vector_store %arg13[%c2_139, %c0_140, %c0_141], %207 {strides = array<i32>} : memref<4x8x32xbf16, #tpu.memory_space<vmem>>, vector<1x8x32xbf16>,
      %c2_142 = arith.constant 2 : index
      %c0_143 = arith.constant 0 : index
      %c0_144 = arith.constant 0 : index
      %208 = vector.load %arg5[%c2_142, %c0_143, %c0_144] : memref<4x32x32xbf16, #tpu.memory_space<vmem>>, vector<1x32x32xbf16>
      %209 = vector.shape_cast %208 : vector<1x32x32xbf16> to vector<32x32xbf16>
      %cst_145 = arith.constant dense<0.000000e+00> : vector<8x32xf32>
      %210 = tpu.matmul %172, %209, %cst_145 {dimension_numbers = #tpu.dot_dimension_numbers<[1], [0], [0], [1], [0, 0, 1, 1], [], []>} : vector<8x32xbf16>, vector<32x32xbf16>, vector<8x32xf32> -> vector<8x32xf32>
      %211 = arith.truncf %210 : vector<8x32xf32> to vector<8x32xbf16>
      %c2_146 = arith.constant 2 : index
      %c0_147 = arith.constant 0 : index
      %c0_148 = arith.constant 0 : index
      %212 = vector.load %arg14[%c2_146, %c0_147, %c0_148] : memref<4x8x32xbf16, #tpu.memory_space<vmem>>, vector<1x8x32xbf16>
      %213 = vector.shape_cast %212 : vector<1x8x32xbf16> to vector<8x32xbf16>
      %214 = vector.shape_cast %211 : vector<8x32xbf16> to vector<1x8x32xbf16>
      tpu.vector_store %arg14[%c2_146, %c0_147, %c0_148], %214 {strides = array<i32>} : memref<4x8x32xbf16, #tpu.memory_space<vmem>>, vector<1x8x32xbf16>,
      %c3_149 = arith.constant 3 : index
      %c0_150 = arith.constant 0 : index
      %c0_151 = arith.constant 0 : index
      %215 = vector.load %arg4[%c3_149, %c0_150, %c0_151] : memref<4x32x32xbf16, #tpu.memory_space<vmem>>, vector<1x32x32xbf16>
      %216 = vector.shape_cast %215 : vector<1x32x32xbf16> to vector<32x32xbf16>
      %cst_152 = arith.constant dense<0.000000e+00> : vector<8x32xf32>
      %217 = tpu.matmul %172, %216, %cst_152 {dimension_numbers = #tpu.dot_dimension_numbers<[1], [0], [0], [1], [0, 0, 1, 1], [], []>} : vector<8x32xbf16>, vector<32x32xbf16>, vector<8x32xf32> -> vector<8x32xf32>
      %218 = arith.truncf %217 : vector<8x32xf32> to vector<8x32xbf16>
      %c3_153 = arith.constant 3 : index
      %c0_154 = arith.constant 0 : index
      %c0_155 = arith.constant 0 : index
      %219 = vector.load %arg13[%c3_153, %c0_154, %c0_155] : memref<4x8x32xbf16, #tpu.memory_space<vmem>>, vector<1x8x32xbf16>
      %220 = vector.shape_cast %219 : vector<1x8x32xbf16> to vector<8x32xbf16>
      %221 = vector.shape_cast %218 : vector<8x32xbf16> to vector<1x8x32xbf16>
      tpu.vector_store %arg13[%c3_153, %c0_154, %c0_155], %221 {strides = array<i32>} : memref<4x8x32xbf16, #tpu.memory_space<vmem>>, vector<1x8x32xbf16>,
      %c3_156 = arith.constant 3 : index
      %c0_157 = arith.constant 0 : index
      %c0_158 = arith.constant 0 : index
      %222 = vector.load %arg5[%c3_156, %c0_157, %c0_158] : memref<4x32x32xbf16, #tpu.memory_space<vmem>>, vector<1x32x32xbf16>
      %223 = vector.shape_cast %222 : vector<1x32x32xbf16> to vector<32x32xbf16>
      %cst_159 = arith.constant dense<0.000000e+00> : vector<8x32xf32>
      %224 = tpu.matmul %172, %223, %cst_159 {dimension_numbers = #tpu.dot_dimension_numbers<[1], [0], [0], [1], [0, 0, 1, 1], [], []>} : vector<8x32xbf16>, vector<32x32xbf16>, vector<8x32xf32> -> vector<8x32xf32>
      %225 = arith.truncf %224 : vector<8x32xf32> to vector<8x32xbf16>
      %c3_160 = arith.constant 3 : index
      %c0_161 = arith.constant 0 : index
      %c0_162 = arith.constant 0 : index
      %226 = vector.load %arg14[%c3_160, %c0_161, %c0_162] : memref<4x8x32xbf16, #tpu.memory_space<vmem>>, vector<1x8x32xbf16>
      %227 = vector.shape_cast %226 : vector<1x8x32xbf16> to vector<8x32xbf16>
      %228 = vector.shape_cast %225 : vector<8x32xbf16> to vector<1x8x32xbf16>
      tpu.vector_store %arg14[%c3_160, %c0_161, %c0_162], %228 {strides = array<i32>} : memref<4x8x32xbf16, #tpu.memory_space<vmem>>, vector<1x8x32xbf16>,
    } else {
    }
    %c8_i32 = arith.constant 8 : i32
    %3 = arith.muli %arg1, %c8_i32 : i32
    %4 = tpu.assume_multiple %3, 8 : i32
    %c0 = arith.constant 0 : index
    %5 = arith.index_cast %4 : i32 to index
    %c0_1 = arith.constant 0 : index
    %6 = vector.load %arg2[%c0, %5, %c0_1] : memref<1x8x32xf32, #tpu.memory_space<vmem>>, vector<1x8x32xf32>
    %7 = vector.shape_cast %6 : vector<1x8x32xf32> to vector<8x32xf32>
    %8 = arith.truncf %7 : vector<8x32xf32> to vector<8x32xbf16>
    %c0_2 = arith.constant 0 : index
    %c0_3 = arith.constant 0 : index
    %c0_4 = arith.constant 0 : index
    %9 = vector.load %arg10[%c0_2, %c0_3, %c0_4] : memref<1x8x8xbf16, #tpu.memory_space<vmem>>, vector<1x8x8xbf16>
    %10 = vector.shape_cast %9 : vector<1x8x8xbf16> to vector<8x8xbf16>
    %11 = arith.extf %10 : vector<8x8xbf16> to vector<8x8xf32>
    %cst = arith.constant 0.000000e+00 : f32
    %12 = vector.broadcast %cst : f32 to vector<8x32xf32>
    %c0_5 = arith.constant 0 : index
    %c0_6 = arith.constant 0 : index
    %c0_7 = arith.constant 0 : index
    %13 = vector.load %arg3[%c0_5, %c0_6, %c0_7] : memref<4x32x32xbf16, #tpu.memory_space<vmem>>, vector<1x32x32xbf16>
    %14 = vector.shape_cast %13 : vector<1x32x32xbf16> to vector<32x32xbf16>
    %cst_8 = arith.constant dense<0.000000e+00> : vector<8x32xf32>
    %15 = tpu.matmul %8, %14, %cst_8 {dimension_numbers = #tpu.dot_dimension_numbers<[1], [0], [0], [1], [0, 0, 1, 1], [], []>} : vector<8x32xbf16>, vector<32x32xbf16>, vector<8x32xf32> -> vector<8x32xf32>
    %16 = arith.truncf %15 : vector<8x32xf32> to vector<8x32xbf16>
    %c0_9 = arith.constant 0 : index
    %c0_10 = arith.constant 0 : index
    %c0_11 = arith.constant 0 : index
    %17 = vector.load %arg13[%c0_9, %c0_10, %c0_11] : memref<4x8x32xbf16, #tpu.memory_space<vmem>>, vector<1x8x32xbf16>
    %18 = vector.shape_cast %17 : vector<1x8x32xbf16> to vector<8x32xbf16>
    %cst_12 = arith.constant dense<0.000000e+00> : vector<8x8xf32>
    %19 = tpu.matmul %16, %18, %cst_12 {dimension_numbers = #tpu.dot_dimension_numbers<[1], [1], [0], [0], [0, 0, 1, 0], [], []>} : vector<8x32xbf16>, vector<8x32xbf16>, vector<8x8xf32> -> vector<8x8xf32>
    %20 = arith.addf %19, %11 : vector<8x8xf32>
    %cst_13 = arith.constant dense<0xFF800000> : vector<8xf32>
    %21 = vector.multi_reduction <maximumf>, %20, %cst_13 [1] : vector<8x8xf32> to vector<8xf32>
    %22 = vector.shape_cast %21 : vector<8xf32> to vector<8x1xf32>
    %23 = vector.broadcast %22 : vector<8x1xf32> to vector<8x8xf32>
    %24 = arith.subf %20, %23 : vector<8x8xf32>
    %25 = math.exp %24 : vector<8x8xf32>
    %cst_14 = arith.constant dense<0.000000e+00> : vector<8xf32>
    %26 = vector.multi_reduction <add>, %25, %cst_14 [1] : vector<8x8xf32> to vector<8xf32>
    %27 = vector.shape_cast %26 : vector<8xf32> to vector<8x1xf32>
    %28 = tpu.reciprocal %27 {approx = true} : vector<8x1xf32> -> vector<8x1xf32>
    %29 = vector.broadcast %28 : vector<8x1xf32> to vector<8x8xf32>
    %30 = arith.mulf %25, %29 : vector<8x8xf32>
    %31 = arith.truncf %30 : vector<8x8xf32> to vector<8x8xbf16>
    %c0_15 = arith.constant 0 : index
    %c0_16 = arith.constant 0 : index
    %c0_17 = arith.constant 0 : index
    %c0_18 = arith.constant 0 : index
    %32 = vector.load %arg12[%c0_15, %c0_16, %c0_17, %c0_18] : memref<1x4x8x8xbf16, #tpu.memory_space<vmem>>, vector<1x1x8x8xbf16>
    %33 = vector.shape_cast %32 : vector<1x1x8x8xbf16> to vector<8x8xbf16>
    %34 = vector.shape_cast %31 : vector<8x8xbf16> to vector<1x1x8x8xbf16>
    tpu.vector_store %arg12[%c0_15, %c0_16, %c0_17, %c0_18], %34 {strides = array<i32>} : memref<1x4x8x8xbf16, #tpu.memory_space<vmem>>, vector<1x1x8x8xbf16>,
    %35 = arith.truncf %30 : vector<8x8xf32> to vector<8x8xbf16>
    %c0_19 = arith.constant 0 : index
    %c0_20 = arith.constant 0 : index
    %c0_21 = arith.constant 0 : index
    %36 = vector.load %arg14[%c0_19, %c0_20, %c0_21] : memref<4x8x32xbf16, #tpu.memory_space<vmem>>, vector<1x8x32xbf16>
    %37 = vector.shape_cast %36 : vector<1x8x32xbf16> to vector<8x32xbf16>
    %cst_22 = arith.constant dense<0.000000e+00> : vector<8x32xf32>
    %38 = tpu.matmul %35, %37, %cst_22 {dimension_numbers = #tpu.dot_dimension_numbers<[1], [0], [0], [1], [0, 0, 1, 1], [], []>} : vector<8x8xbf16>, vector<8x32xbf16>, vector<8x32xf32> -> vector<8x32xf32>
    %39 = arith.truncf %38 : vector<8x32xf32> to vector<8x32xbf16>
    %c0_23 = arith.constant 0 : index
    %c0_24 = arith.constant 0 : index
    %c0_25 = arith.constant 0 : index
    %40 = vector.load %arg6[%c0_23, %c0_24, %c0_25] : memref<4x32x32xbf16, #tpu.memory_space<vmem>>, vector<1x32x32xbf16>
    %41 = vector.shape_cast %40 : vector<1x32x32xbf16> to vector<32x32xbf16>
    %cst_26 = arith.constant dense<0.000000e+00> : vector<8x32xf32>
    %42 = tpu.matmul %39, %41, %cst_26 {dimension_numbers = #tpu.dot_dimension_numbers<[1], [0], [0], [1], [0, 0, 1, 1], [], []>} : vector<8x32xbf16>, vector<32x32xbf16>, vector<8x32xf32> -> vector<8x32xf32>
    %43 = arith.addf %12, %42 : vector<8x32xf32>
    %c1 = arith.constant 1 : index
    %c0_27 = arith.constant 0 : index
    %c0_28 = arith.constant 0 : index
    %44 = vector.load %arg3[%c1, %c0_27, %c0_28] : memref<4x32x32xbf16, #tpu.memory_space<vmem>>, vector<1x32x32xbf16>
    %45 = vector.shape_cast %44 : vector<1x32x32xbf16> to vector<32x32xbf16>
    %cst_29 = arith.constant dense<0.000000e+00> : vector<8x32xf32>
    %46 = tpu.matmul %8, %45, %cst_29 {dimension_numbers = #tpu.dot_dimension_numbers<[1], [0], [0], [1], [0, 0, 1, 1], [], []>} : vector<8x32xbf16>, vector<32x32xbf16>, vector<8x32xf32> -> vector<8x32xf32>
    %47 = arith.truncf %46 : vector<8x32xf32> to vector<8x32xbf16>
    %c1_30 = arith.constant 1 : index
    %c0_31 = arith.constant 0 : index
    %c0_32 = arith.constant 0 : index
    %48 = vector.load %arg13[%c1_30, %c0_31, %c0_32] : memref<4x8x32xbf16, #tpu.memory_space<vmem>>, vector<1x8x32xbf16>
    %49 = vector.shape_cast %48 : vector<1x8x32xbf16> to vector<8x32xbf16>
    %cst_33 = arith.constant dense<0.000000e+00> : vector<8x8xf32>
    %50 = tpu.matmul %47, %49, %cst_33 {dimension_numbers = #tpu.dot_dimension_numbers<[1], [1], [0], [0], [0, 0, 1, 0], [], []>} : vector<8x32xbf16>, vector<8x32xbf16>, vector<8x8xf32> -> vector<8x8xf32>
    %51 = arith.addf %50, %11 : vector<8x8xf32>
    %cst_34 = arith.constant dense<0xFF800000> : vector<8xf32>
    %52 = vector.multi_reduction <maximumf>, %51, %cst_34 [1] : vector<8x8xf32> to vector<8xf32>
    %53 = vector.shape_cast %52 : vector<8xf32> to vector<8x1xf32>
    %54 = vector.broadcast %53 : vector<8x1xf32> to vector<8x8xf32>
    %55 = arith.subf %51, %54 : vector<8x8xf32>
    %56 = math.exp %55 : vector<8x8xf32>
    %cst_35 = arith.constant dense<0.000000e+00> : vector<8xf32>
    %57 = vector.multi_reduction <add>, %56, %cst_35 [1] : vector<8x8xf32> to vector<8xf32>
    %58 = vector.shape_cast %57 : vector<8xf32> to vector<8x1xf32>
    %59 = tpu.reciprocal %58 {approx = true} : vector<8x1xf32> -> vector<8x1xf32>
    %60 = vector.broadcast %59 : vector<8x1xf32> to vector<8x8xf32>
    %61 = arith.mulf %56, %60 : vector<8x8xf32>
    %62 = arith.truncf %61 : vector<8x8xf32> to vector<8x8xbf16>
    %c0_36 = arith.constant 0 : index
    %c1_37 = arith.constant 1 : index
    %c0_38 = arith.constant 0 : index
    %c0_39 = arith.constant 0 : index
    %63 = vector.load %arg12[%c0_36, %c1_37, %c0_38, %c0_39] : memref<1x4x8x8xbf16, #tpu.memory_space<vmem>>, vector<1x1x8x8xbf16>
    %64 = vector.shape_cast %63 : vector<1x1x8x8xbf16> to vector<8x8xbf16>
    %65 = vector.shape_cast %62 : vector<8x8xbf16> to vector<1x1x8x8xbf16>
    tpu.vector_store %arg12[%c0_36, %c1_37, %c0_38, %c0_39], %65 {strides = array<i32>} : memref<1x4x8x8xbf16, #tpu.memory_space<vmem>>, vector<1x1x8x8xbf16>,
    %66 = arith.truncf %61 : vector<8x8xf32> to vector<8x8xbf16>
    %c1_40 = arith.constant 1 : index
    %c0_41 = arith.constant 0 : index
    %c0_42 = arith.constant 0 : index
    %67 = vector.load %arg14[%c1_40, %c0_41, %c0_42] : memref<4x8x32xbf16, #tpu.memory_space<vmem>>, vector<1x8x32xbf16>
    %68 = vector.shape_cast %67 : vector<1x8x32xbf16> to vector<8x32xbf16>
    %cst_43 = arith.constant dense<0.000000e+00> : vector<8x32xf32>
    %69 = tpu.matmul %66, %68, %cst_43 {dimension_numbers = #tpu.dot_dimension_numbers<[1], [0], [0], [1], [0, 0, 1, 1], [], []>} : vector<8x8xbf16>, vector<8x32xbf16>, vector<8x32xf32> -> vector<8x32xf32>
    %70 = arith.truncf %69 : vector<8x32xf32> to vector<8x32xbf16>
    %c1_44 = arith.constant 1 : index
    %c0_45 = arith.constant 0 : index
    %c0_46 = arith.constant 0 : index
    %71 = vector.load %arg6[%c1_44, %c0_45, %c0_46] : memref<4x32x32xbf16, #tpu.memory_space<vmem>>, vector<1x32x32xbf16>
    %72 = vector.shape_cast %71 : vector<1x32x32xbf16> to vector<32x32xbf16>
    %cst_47 = arith.constant dense<0.000000e+00> : vector<8x32xf32>
    %73 = tpu.matmul %70, %72, %cst_47 {dimension_numbers = #tpu.dot_dimension_numbers<[1], [0], [0], [1], [0, 0, 1, 1], [], []>} : vector<8x32xbf16>, vector<32x32xbf16>, vector<8x32xf32> -> vector<8x32xf32>
    %74 = arith.addf %43, %73 : vector<8x32xf32>
    %c2 = arith.constant 2 : index
    %c0_48 = arith.constant 0 : index
    %c0_49 = arith.constant 0 : index
    %75 = vector.load %arg3[%c2, %c0_48, %c0_49] : memref<4x32x32xbf16, #tpu.memory_space<vmem>>, vector<1x32x32xbf16>
    %76 = vector.shape_cast %75 : vector<1x32x32xbf16> to vector<32x32xbf16>
    %cst_50 = arith.constant dense<0.000000e+00> : vector<8x32xf32>
    %77 = tpu.matmul %8, %76, %cst_50 {dimension_numbers = #tpu.dot_dimension_numbers<[1], [0], [0], [1], [0, 0, 1, 1], [], []>} : vector<8x32xbf16>, vector<32x32xbf16>, vector<8x32xf32> -> vector<8x32xf32>
    %78 = arith.truncf %77 : vector<8x32xf32> to vector<8x32xbf16>
    %c2_51 = arith.constant 2 : index
    %c0_52 = arith.constant 0 : index
    %c0_53 = arith.constant 0 : index
    %79 = vector.load %arg13[%c2_51, %c0_52, %c0_53] : memref<4x8x32xbf16, #tpu.memory_space<vmem>>, vector<1x8x32xbf16>
    %80 = vector.shape_cast %79 : vector<1x8x32xbf16> to vector<8x32xbf16>
    %cst_54 = arith.constant dense<0.000000e+00> : vector<8x8xf32>
    %81 = tpu.matmul %78, %80, %cst_54 {dimension_numbers = #tpu.dot_dimension_numbers<[1], [1], [0], [0], [0, 0, 1, 0], [], []>} : vector<8x32xbf16>, vector<8x32xbf16>, vector<8x8xf32> -> vector<8x8xf32>
    %82 = arith.addf %81, %11 : vector<8x8xf32>
    %cst_55 = arith.constant dense<0xFF800000> : vector<8xf32>
    %83 = vector.multi_reduction <maximumf>, %82, %cst_55 [1] : vector<8x8xf32> to vector<8xf32>
    %84 = vector.shape_cast %83 : vector<8xf32> to vector<8x1xf32>
    %85 = vector.broadcast %84 : vector<8x1xf32> to vector<8x8xf32>
    %86 = arith.subf %82, %85 : vector<8x8xf32>
    %87 = math.exp %86 : vector<8x8xf32>
    %cst_56 = arith.constant dense<0.000000e+00> : vector<8xf32>
    %88 = vector.multi_reduction <add>, %87, %cst_56 [1] : vector<8x8xf32> to vector<8xf32>
    %89 = vector.shape_cast %88 : vector<8xf32> to vector<8x1xf32>
    %90 = tpu.reciprocal %89 {approx = true} : vector<8x1xf32> -> vector<8x1xf32>
    %91 = vector.broadcast %90 : vector<8x1xf32> to vector<8x8xf32>
    %92 = arith.mulf %87, %91 : vector<8x8xf32>
    %93 = arith.truncf %92 : vector<8x8xf32> to vector<8x8xbf16>
    %c0_57 = arith.constant 0 : index
    %c2_58 = arith.constant 2 : index
    %c0_59 = arith.constant 0 : index
    %c0_60 = arith.constant 0 : index
    %94 = vector.load %arg12[%c0_57, %c2_58, %c0_59, %c0_60] : memref<1x4x8x8xbf16, #tpu.memory_space<vmem>>, vector<1x1x8x8xbf16>
    %95 = vector.shape_cast %94 : vector<1x1x8x8xbf16> to vector<8x8xbf16>
    %96 = vector.shape_cast %93 : vector<8x8xbf16> to vector<1x1x8x8xbf16>
    tpu.vector_store %arg12[%c0_57, %c2_58, %c0_59, %c0_60], %96 {strides = array<i32>} : memref<1x4x8x8xbf16, #tpu.memory_space<vmem>>, vector<1x1x8x8xbf16>,
    %97 = arith.truncf %92 : vector<8x8xf32> to vector<8x8xbf16>
    %c2_61 = arith.constant 2 : index
    %c0_62 = arith.constant 0 : index
    %c0_63 = arith.constant 0 : index
    %98 = vector.load %arg14[%c2_61, %c0_62, %c0_63] : memref<4x8x32xbf16, #tpu.memory_space<vmem>>, vector<1x8x32xbf16>
    %99 = vector.shape_cast %98 : vector<1x8x32xbf16> to vector<8x32xbf16>
    %cst_64 = arith.constant dense<0.000000e+00> : vector<8x32xf32>
    %100 = tpu.matmul %97, %99, %cst_64 {dimension_numbers = #tpu.dot_dimension_numbers<[1], [0], [0], [1], [0, 0, 1, 1], [], []>} : vector<8x8xbf16>, vector<8x32xbf16>, vector<8x32xf32> -> vector<8x32xf32>
    %101 = arith.truncf %100 : vector<8x32xf32> to vector<8x32xbf16>
    %c2_65 = arith.constant 2 : index
    %c0_66 = arith.constant 0 : index
    %c0_67 = arith.constant 0 : index
    %102 = vector.load %arg6[%c2_65, %c0_66, %c0_67] : memref<4x32x32xbf16, #tpu.memory_space<vmem>>, vector<1x32x32xbf16>
    %103 = vector.shape_cast %102 : vector<1x32x32xbf16> to vector<32x32xbf16>
    %cst_68 = arith.constant dense<0.000000e+00> : vector<8x32xf32>
    %104 = tpu.matmul %101, %103, %cst_68 {dimension_numbers = #tpu.dot_dimension_numbers<[1], [0], [0], [1], [0, 0, 1, 1], [], []>} : vector<8x32xbf16>, vector<32x32xbf16>, vector<8x32xf32> -> vector<8x32xf32>
    %105 = arith.addf %74, %104 : vector<8x32xf32>
    %c3 = arith.constant 3 : index
    %c0_69 = arith.constant 0 : index
    %c0_70 = arith.constant 0 : index
    %106 = vector.load %arg3[%c3, %c0_69, %c0_70] : memref<4x32x32xbf16, #tpu.memory_space<vmem>>, vector<1x32x32xbf16>
    %107 = vector.shape_cast %106 : vector<1x32x32xbf16> to vector<32x32xbf16>
    %cst_71 = arith.constant dense<0.000000e+00> : vector<8x32xf32>
    %108 = tpu.matmul %8, %107, %cst_71 {dimension_numbers = #tpu.dot_dimension_numbers<[1], [0], [0], [1], [0, 0, 1, 1], [], []>} : vector<8x32xbf16>, vector<32x32xbf16>, vector<8x32xf32> -> vector<8x32xf32>
    %109 = arith.truncf %108 : vector<8x32xf32> to vector<8x32xbf16>
    %c3_72 = arith.constant 3 : index
    %c0_73 = arith.constant 0 : index
    %c0_74 = arith.constant 0 : index
    %110 = vector.load %arg13[%c3_72, %c0_73, %c0_74] : memref<4x8x32xbf16, #tpu.memory_space<vmem>>, vector<1x8x32xbf16>
    %111 = vector.shape_cast %110 : vector<1x8x32xbf16> to vector<8x32xbf16>
    %cst_75 = arith.constant dense<0.000000e+00> : vector<8x8xf32>
    %112 = tpu.matmul %109, %111, %cst_75 {dimension_numbers = #tpu.dot_dimension_numbers<[1], [1], [0], [0], [0, 0, 1, 0], [], []>} : vector<8x32xbf16>, vector<8x32xbf16>, vector<8x8xf32> -> vector<8x8xf32>
    %113 = arith.addf %112, %11 : vector<8x8xf32>
    %cst_76 = arith.constant dense<0xFF800000> : vector<8xf32>
    %114 = vector.multi_reduction <maximumf>, %113, %cst_76 [1] : vector<8x8xf32> to vector<8xf32>
    %115 = vector.shape_cast %114 : vector<8xf32> to vector<8x1xf32>
    %116 = vector.broadcast %115 : vector<8x1xf32> to vector<8x8xf32>
    %117 = arith.subf %113, %116 : vector<8x8xf32>
    %118 = math.exp %117 : vector<8x8xf32>
    %cst_77 = arith.constant dense<0.000000e+00> : vector<8xf32>
    %119 = vector.multi_reduction <add>, %118, %cst_77 [1] : vector<8x8xf32> to vector<8xf32>
    %120 = vector.shape_cast %119 : vector<8xf32> to vector<8x1xf32>
    %121 = tpu.reciprocal %120 {approx = true} : vector<8x1xf32> -> vector<8x1xf32>
    %122 = vector.broadcast %121 : vector<8x1xf32> to vector<8x8xf32>
    %123 = arith.mulf %118, %122 : vector<8x8xf32>
    %124 = arith.truncf %123 : vector<8x8xf32> to vector<8x8xbf16>
    %c0_78 = arith.constant 0 : index
    %c3_79 = arith.constant 3 : index
    %c0_80 = arith.constant 0 : index
    %c0_81 = arith.constant 0 : index
    %125 = vector.load %arg12[%c0_78, %c3_79, %c0_80, %c0_81] : memref<1x4x8x8xbf16, #tpu.memory_space<vmem>>, vector<1x1x8x8xbf16>
    %126 = vector.shape_cast %125 : vector<1x1x8x8xbf16> to vector<8x8xbf16>
    %127 = vector.shape_cast %124 : vector<8x8xbf16> to vector<1x1x8x8xbf16>
    tpu.vector_store %arg12[%c0_78, %c3_79, %c0_80, %c0_81], %127 {strides = array<i32>} : memref<1x4x8x8xbf16, #tpu.memory_space<vmem>>, vector<1x1x8x8xbf16>,
    %128 = arith.truncf %123 : vector<8x8xf32> to vector<8x8xbf16>
    %c3_82 = arith.constant 3 : index
    %c0_83 = arith.constant 0 : index
    %c0_84 = arith.constant 0 : index
    %129 = vector.load %arg14[%c3_82, %c0_83, %c0_84] : memref<4x8x32xbf16, #tpu.memory_space<vmem>>, vector<1x8x32xbf16>
    %130 = vector.shape_cast %129 : vector<1x8x32xbf16> to vector<8x32xbf16>
    %cst_85 = arith.constant dense<0.000000e+00> : vector<8x32xf32>
    %131 = tpu.matmul %128, %130, %cst_85 {dimension_numbers = #tpu.dot_dimension_numbers<[1], [0], [0], [1], [0, 0, 1, 1], [], []>} : vector<8x8xbf16>, vector<8x32xbf16>, vector<8x32xf32> -> vector<8x32xf32>
    %132 = arith.truncf %131 : vector<8x32xf32> to vector<8x32xbf16>
    %c3_86 = arith.constant 3 : index
    %c0_87 = arith.constant 0 : index
    %c0_88 = arith.constant 0 : index
    %133 = vector.load %arg6[%c3_86, %c0_87, %c0_88] : memref<4x32x32xbf16, #tpu.memory_space<vmem>>, vector<1x32x32xbf16>
    %134 = vector.shape_cast %133 : vector<1x32x32xbf16> to vector<32x32xbf16>
    %cst_89 = arith.constant dense<0.000000e+00> : vector<8x32xf32>
    %135 = tpu.matmul %132, %134, %cst_89 {dimension_numbers = #tpu.dot_dimension_numbers<[1], [0], [0], [1], [0, 0, 1, 1], [], []>} : vector<8x32xbf16>, vector<32x32xbf16>, vector<8x32xf32> -> vector<8x32xf32>
    %136 = arith.addf %105, %135 : vector<8x32xf32>
    %c0_90 = arith.constant 0 : index
    %c0_91 = arith.constant 0 : index
    %137 = vector.load %arg7[%c0_90, %c0_91] : memref<1x32xf32, #tpu.memory_space<vmem>>, vector<1x32xf32>
    %138 = vector.broadcast %137 : vector<1x32xf32> to vector<8x32xf32>
    %139 = arith.addf %136, %138 : vector<8x32xf32>
    %140 = arith.addf %139, %7 : vector<8x32xf32>
    %cst_92 = arith.constant dense<0.000000e+00> : vector<8xf32>
    %141 = vector.multi_reduction <add>, %140, %cst_92 [1] : vector<8x32xf32> to vector<8xf32>
    %142 = vector.shape_cast %141 : vector<8xf32> to vector<8x1xf32>
    %cst_93 = arith.constant 3.200000e+01 : f32
    %143 = vector.broadcast %cst_93 : f32 to vector<8x1xf32>
    %144 = arith.divf %142, %143 : vector<8x1xf32>
    %145 = vector.broadcast %144 : vector<8x1xf32> to vector<8x32xf32>
    %146 = arith.subf %140, %145 : vector<8x32xf32>
    %147 = vector.broadcast %144 : vector<8x1xf32> to vector<8x32xf32>
    %148 = arith.subf %140, %147 : vector<8x32xf32>
    %149 = arith.mulf %146, %148 : vector<8x32xf32>
    %cst_94 = arith.constant dense<0.000000e+00> : vector<8xf32>
    %150 = vector.multi_reduction <add>, %149, %cst_94 [1] : vector<8x32xf32> to vector<8xf32>
    %151 = vector.shape_cast %150 : vector<8xf32> to vector<8x1xf32>
    %cst_95 = arith.constant 3.200000e+01 : f32
    %152 = vector.broadcast %cst_95 : f32 to vector<8x1xf32>
    %153 = arith.divf %151, %152 : vector<8x1xf32>
    %154 = vector.broadcast %144 : vector<8x1xf32> to vector<8x32xf32>
    %155 = arith.subf %140, %154 : vector<8x32xf32>
    %cst_96 = arith.constant 9.99999974E-6 : f32
    %156 = vector.broadcast %cst_96 : f32 to vector<8x1xf32>
    %157 = arith.addf %153, %156 : vector<8x1xf32>
    %158 = math.rsqrt %157 : vector<8x1xf32>
    %159 = vector.broadcast %158 : vector<8x1xf32> to vector<8x32xf32>
    %160 = arith.mulf %155, %159 : vector<8x32xf32>
    %c0_97 = arith.constant 0 : index
    %c0_98 = arith.constant 0 : index
    %161 = vector.load %arg8[%c0_97, %c0_98] : memref<1x32xf32, #tpu.memory_space<vmem>>, vector<1x32xf32>
    %162 = vector.broadcast %161 : vector<1x32xf32> to vector<8x32xf32>
    %163 = arith.mulf %160, %162 : vector<8x32xf32>
    %c0_99 = arith.constant 0 : index
    %c0_100 = arith.constant 0 : index
    %164 = vector.load %arg9[%c0_99, %c0_100] : memref<1x32xf32, #tpu.memory_space<vmem>>, vector<1x32xf32>
    %165 = vector.broadcast %164 : vector<1x32xf32> to vector<8x32xf32>
    %166 = arith.addf %163, %165 : vector<8x32xf32>
    %c0_101 = arith.constant 0 : index
    %c0_102 = arith.constant 0 : index
    %c0_103 = arith.constant 0 : index
    %167 = vector.load %arg11[%c0_101, %c0_102, %c0_103] : memref<1x8x32xf32, #tpu.memory_space<vmem>>, vector<1x8x32xf32>
    %168 = vector.shape_cast %167 : vector<1x8x32xf32> to vector<8x32xf32>
    %169 = vector.shape_cast %166 : vector<8x32xf32> to vector<1x8x32xf32>
    tpu.vector_store %arg11[%c0_101, %c0_102, %c0_103], %169 {strides = array<i32>} : memref<1x8x32xf32, #tpu.memory_space<vmem>>, vector<1x8x32xf32>,
    return
  }
  func.func @transform_0(%arg0: i32, %arg1: i32) -> (i32, i32, i32) {
    %c0_i32 = arith.constant 0 : i32
    %c0_i32_0 = arith.constant 0 : i32
    %c0_i32_1 = arith.constant 0 : i32
    return %arg0, %c0_i32, %c0_i32_0 : i32, i32, i32
  }
  func.func @transform_1(%arg0: i32, %arg1: i32) -> (i32, i32, i32) {
    %c0_i32 = arith.constant 0 : i32
    %c0_i32_0 = arith.constant 0 : i32
    %c0_i32_1 = arith.constant 0 : i32
    %c0_i32_2 = arith.constant 0 : i32
    return %c0_i32, %c0_i32_0, %c0_i32_1 : i32, i32, i32
  }
  func.func @transform_2(%arg0: i32, %arg1: i32) -> (i32, i32, i32) {
    %c0_i32 = arith.constant 0 : i32
    %c0_i32_0 = arith.constant 0 : i32
    %c0_i32_1 = arith.constant 0 : i32
    %c0_i32_2 = arith.constant 0 : i32
    return %c0_i32, %c0_i32_0, %c0_i32_1 : i32, i32, i32
  }
  func.func @transform_3(%arg0: i32, %arg1: i32) -> (i32, i32, i32) {
    %c0_i32 = arith.constant 0 : i32
    %c0_i32_0 = arith.constant 0 : i32
    %c0_i32_1 = arith.constant 0 : i32
    %c0_i32_2 = arith.constant 0 : i32
    return %c0_i32, %c0_i32_0, %c0_i32_1 : i32, i32, i32
  }
  func.func @transform_4(%arg0: i32, %arg1: i32) -> (i32, i32, i32) {
    %c0_i32 = arith.constant 0 : i32
    %c0_i32_0 = arith.constant 0 : i32
    %c0_i32_1 = arith.constant 0 : i32
    %c0_i32_2 = arith.constant 0 : i32
    return %c0_i32, %c0_i32_0, %c0_i32_1 : i32, i32, i32
  }
  func.func @transform_5(%arg0: i32, %arg1: i32) -> (i32, i32) {
    %c0_i32 = arith.constant 0 : i32
    %c0_i32_0 = arith.constant 0 : i32
    %c0_i32_1 = arith.constant 0 : i32
    return %c0_i32, %c0_i32_0 : i32, i32
  }
  func.func @transform_6(%arg0: i32, %arg1: i32) -> (i32, i32) {
    %c0_i32 = arith.constant 0 : i32
    %c0_i32_0 = arith.constant 0 : i32
    %c0_i32_1 = arith.constant 0 : i32
    return %c0_i32, %c0_i32_0 : i32, i32
  }
  func.func @transform_7(%arg0: i32, %arg1: i32) -> (i32, i32) {
    %c0_i32 = arith.constant 0 : i32
    %c0_i32_0 = arith.constant 0 : i32
    %c0_i32_1 = arith.constant 0 : i32
    return %c0_i32, %c0_i32_0 : i32, i32
  }
  func.func @transform_8(%arg0: i32, %arg1: i32) -> (i32, i32, i32) {
    %c0_i32 = arith.constant 0 : i32
    %c0_i32_0 = arith.constant 0 : i32
    return %arg0, %arg1, %c0_i32 : i32, i32, i32
  }
  func.func @transform_9(%arg0: i32, %arg1: i32) -> (i32, i32, i32) {
    %c0_i32 = arith.constant 0 : i32
    %c0_i32_0 = arith.constant 0 : i32
    return %arg0, %arg1, %c0_i32 : i32, i32, i32
  }
  func.func @transform_10(%arg0: i32, %arg1: i32) -> (i32, i32, i32, i32) {
    %c0_i32 = arith.constant 0 : i32
    %c0_i32_0 = arith.constant 0 : i32
    %c0_i32_1 = arith.constant 0 : i32
    return %arg0, %c0_i32, %arg1, %c0_i32_0 : i32, i32, i32, i32
  }
}

</mosaic_0001>

<bundles_post_ra>
// kernel: tpu_custom_call.1
= control target key start
LH: loop header
LB: loop body
LE: loop exit
PB: predicated region body
PF: predicated region fallthrough
CT: control target
= control target key end

     0   :  { %s3843_s0 = inlined_call_operand.hbm [shape: f32[2,8,32], index: 0, kind: input, shape index: {}]   ;;  %s3844_s1 = inlined_call_operand.hbm [shape: bf16[4,32,32], index: 1, kind: input, shape index: {}]   ;;  %s3845_s2 = inlined_call_operand.hbm [shape: bf16[4,32,32], index: 2, kind: input, shape index: {}]   ;;  %s3846_s3 = inlined_call_operand.hbm [shape: bf16[4,32,32], index: 3, kind: input, shape index: {}]   ;;  %s3847_s4 = inlined_call_operand.hbm [shape: bf16[4,32,32], index: 4, kind: input, shape index: {}]   ;;  %s3848_s5 = inlined_call_operand.hbm [shape: f32[1,32], index: 5, kind: input, shape index: {}]   ;;  %s3849_s6 = inlined_call_operand.hbm [shape: f32[1,32], index: 6, kind: input, shape index: {}]   ;;  %s3850_s7 = inlined_call_operand.hbm [shape: f32[1,32], index: 7, kind: input, shape index: {}]   ;;  %s3851_s8 = inlined_call_operand.hbm [shape: bf16[2,8,8], index: 8, kind: input, shape index: {}]   ;;  %s3852_s9 = inlined_call_operand.hbm [shape: f32[2,8,32], index: 9, kind: output, shape index: {0}]   ;;  %s3853_s10 = inlined_call_operand.hbm [shape: bf16[2,4,8,8], index: 10, kind: output, shape index: {1}]  }
   0x1   :  { %3875 = sst [smem:[#allocation36_spill]] %s3843_s0 }
   0x2   :  { %3876 = sst [smem:[#allocation37_spill]] %s3844_s1 }
   0x3   :  { %3877 = sst [smem:[#allocation38_spill]] %s3845_s2 }
   0x4   :  { %3878 = sst [smem:[#allocation39_spill]] %s3846_s3 }
   0x5   :  { %3879 = sst [smem:[#allocation40_spill]] %s3848_s5 }
   0x6   :  { %3880 = sst [smem:[#allocation41_spill]] %s3852_s9 }
   0x7   :  { %3881 = sst [smem:[#allocation42_spill]] %s3853_s10 }
   0x8   :  { %16 = vsyncpa [#allocation5], 0 }
   0x9   :  { %18 = vsyncpa [#allocation5 + $0x1], 0 }
   0xa   :  { %19 = vsyncpa [#allocation8], 0 }
   0xb   :  { %20 = vsyncpa [#allocation11], 0 }
   0xc   :  { %21 = vsyncpa [#allocation14], 0 }
   0xd   :  { %22 = vsyncpa [#allocation17], 0 }
   0xe   :  { %23 = vsyncpa [#allocation6], 0 }
   0xf   :  { %25 = vsyncpa [#allocation6 + $0x1], 0 }
  0x10   :  { %26 = vsyncpa [#allocation21], 0 }
  0x11   :  { %28 = vsyncpa [#allocation21 + $0x1], 0  ;;  %s3229_s13 = smov 0   ;;  %s3231_s14 = smov 0  }
  0x12   :  { %s3233_s15 = smov 0   ;;  %s3235_s16 = smov 0  }
  0x13   :  { %s3237_s17 = smov 0   ;;  %s3239_s18 = smov 0  }
  0x14 LB: > { %3882 = sst [smem:[#allocation30_spill]] %s3143_s15  ;;  %s3260_s19 = sadd.s32 4294967295, %s3155_s18   ;;  %s3155_s18 = sphi %s3239_s18, %s34_s18   ;;  %s3151_s17 = sphi %s3237_s17, %s3933_s17   ;;  %s3147_s16 = sphi %s3235_s16, %s3932_s16   ;;  %s3143_s15 = sphi %s3233_s15, %s3928_s15   ;;  %s3139_s14 = sphi %s3231_s14, %s3931_s14   ;;  %s3135_s13 = sphi %s3229_s13, %s3930_s13  }
  0x15   : > { %3883 = sst [smem:[#allocation31_spill]] %s3147_s16  ;;  %p2231_p0 = scmp.ge.s32.totalorder %s3155_s18, 1 }
  0x16   : > { %3884 = sst [smem:[#allocation32_spill]] %s3155_s18  ;;  %p3858_p1 = scmp.eq.s32.totalorder %s3260_s19, 0 }
  0x17   : > { %p308_p2 = scmp.lt.s32.totalorder %s3155_s18, 3  ;;  %s3157_s21 = smov [#allocation7]  }
  0x18   : > { %s320_s22 = sshll.u32 %s3157_s21, 4  ;;  %s3158_s24 = smov [#allocation10]   ;;  %s3269_s22 = int_to_ptr.vmem [resolvable:$true] %s320_s22 }
  0x19   : > { %p3265_p3 = pnand %p2231_p0, %p308_p2  ;;  %s346_s25 = sshll.u32 %s3158_s24, 4  ;;  %s3280_s25 = int_to_ptr.vmem [resolvable:$true] %s346_s25 }
  0x1a   : > { %s3159_s26 = smov [#allocation13]   ;;  %s3888_s1 = sld [smem:[#allocation37_spill]] }
  0x1b   : > { %s3885_s20 = scalar_select %p3265_p3, 1, 0 }
  0x1c   : > { %p2602_p4 = pneg %p3265_p3  ;;  %s3282_s27 = sshll.u32 %s3159_s26, 4  ;;  %s374_s27 = int_to_ptr.vmem [resolvable:$true] %s3282_s27 }
  0x1d   : > { %3886 = sst [smem:[#allocation33_spill]] %s3885_s20 }
  0x1e   : > { %p3276_p6 = pnand %p2602_p4, %p3858_p1 }
  0x20   : > { %s3887_s23 = scalar_select %p3276_p6, 1, 0 }
  0x21   : > { %s2765_s30 = scalar_lea.hbm %s3888_s1, 1024  ;;  %p3292_p8 = pneg %p3276_p6 }
  0x22   : > { %p2766_p7 = scmp.ne.s32.totalorder %s3888_s1, %s2765_s30  ;;  %p2772_p11 = scmp.lt.u32.totalorder %s2765_s30, %s3888_s1 }
  0x24   : > { %p2768_p9 = pnand %p3292_p8, %p2766_p7 }
  0x26   : > { %p2769_p10 = pneg %p2768_p9 }
  0x28   : > { %p2774_p12 = pnand %p2772_p11, %p2769_p10 }
  0x2a   : > { %2777 = shalt.err (!%p2774_p12)
}
  0x2b   : > { %s2778_s28 = scalar_lea.vmem %s3269_s22, 1024  ;;  %p2786_p4 = scmp.lt.s32.totalorder %s3269_s22, %s3269_s22 }
  0x2c   : > { %p2779_p13 = scmp.ne.s32.totalorder %s3269_s22, %s2778_s28  ;;  %p2787_p5 = scmp.lt.s32.totalorder %s2778_s28, %s2778_s28 }
  0x2e   : > { %p2781_p0 = pnand %p2779_p13, %p3292_p8  ;;  %p2788_p7 = por %p2787_p5, %p2786_p4 }
  0x30   : > { %p2782_p2 = pneg %p2781_p0 }
  0x32   : > { %p2789_p9 = pnand %p2788_p7, %p2782_p2 }
  0x34   : > { %2792 = shalt.err (!%p2789_p9)
}
  0x35   : > { %s3860_s29 = smov 64   ;;  %s3862_s30 = smov 4  }
  0x36   : > { %2605 = dma.hbm_to_vmem [thread:$0]  (!%p3276_p6), %s3888_s1, 1024, %s3269_s22, [#allocation8], %s3860_s29, %s3860_s29, %s3862_s30  }
  0x37   : > { %s3890_s3 = sld [smem:[#allocation39_spill]] }
  0x3d   : > { %s2793_s28 = scalar_lea.hbm %s3890_s3, 1024 }
  0x3e   : > { %p2794_p5 = scmp.ne.s32.totalorder %s3890_s3, %s2793_s28  ;;  %p2800_p12 = scmp.lt.u32.totalorder %s2793_s28, %s3890_s3 }
  0x40   : > { %p2796_p10 = pnand %p2794_p5, %p3292_p8 }
  0x42   : > { %p2797_p11 = pneg %p2796_p10 }
  0x44   : > { %p2802_p13 = pnand %p2800_p12, %p2797_p11 }
  0x46   : > { %2805 = shalt.err (!%p2802_p13)
}
  0x47   : > { %s2806_s22 = scalar_lea.vmem %s3280_s25, 1024  ;;  %p2814_p7 = scmp.lt.s32.totalorder %s3280_s25, %s3280_s25 }
  0x48   : > { %p2807_p0 = scmp.ne.s32.totalorder %s3280_s25, %s2806_s22  ;;  %p2815_p9 = scmp.lt.s32.totalorder %s2806_s22, %s2806_s22 }
  0x4a   : > { %p2809_p2 = pnand %p2807_p0, %p3292_p8  ;;  %p2816_p5 = por %p2815_p9, %p2814_p7 }
  0x4c   : > { %p2810_p4 = pneg %p2809_p2 }
  0x4e   : > { %p2817_p10 = pnand %p2816_p5, %p2810_p4 }
  0x50   : > { %2820 = shalt.err (!%p2817_p10)
}
  0x51   : > { %2611 = dma.hbm_to_vmem [thread:$0]  (!%p3276_p6), %s3890_s3, 1024, %s3280_s25, [#allocation11], %s3860_s29, %s3860_s29, %s3862_s30  }
  0x52   : > { %s3891_s5 = sld [smem:[#allocation40_spill]] }
  0x58   : > { %s2821_s11 = scalar_lea.hbm %s3891_s5, 16 }
  0x59   : > { %p2822_p11 = scmp.ne.s32.totalorder %s3891_s5, %s2821_s11  ;;  %p2828_p0 = scmp.lt.u32.totalorder %s2821_s11, %s3891_s5 }
  0x5b   : > { %p2824_p12 = pnand %p2822_p11, %p3292_p8 }
  0x5d   : > { %p2825_p13 = pneg %p2824_p12 }
  0x5f   : > { %p2830_p2 = pnand %p2828_p0, %p2825_p13 }
  0x61   : > { %2833 = shalt.err (!%p2830_p2)
}
  0x62   : > { %s2834_s22 = scalar_lea.vmem %s374_s27, 16  ;;  %s2841_s25 = scalar_lea.vmem %s374_s27, 32 }
  0x63   : > { %p2835_p4 = scmp.ne.s32.totalorder %s374_s27, %s2834_s22  ;;  %p2842_p5 = scmp.lt.s32.totalorder %s374_s27, %s374_s27 }
  0x64   : > { %p2843_p10 = scmp.lt.s32.totalorder %s2841_s25, %s2834_s22 }
  0x65   : > { %p2837_p7 = pnand %p2835_p4, %p3292_p8 }
  0x66   : > { %p2844_p1 = por %p2843_p10, %p2842_p5 }
  0x67   : > { %p2838_p9 = pneg %p2837_p7 }
  0x69   : > { %p2845_p3 = pnand %p2844_p1, %p2838_p9 }
  0x6b   : > { %2848 = shalt.err (!%p2845_p3)
}
  0x6c   : > { %2617 = dma.hbm_to_vmem [thread:$0]  (!%p3276_p6), %s3891_s5, 16, %s374_s27, [#allocation14]  }
  0x6d   : > { %s2230_s16 = sadd.s32 4294967294, %s3155_s18   ;;  %s46_s20 = sadd.s32 1, %s3151_s17 }
  0x6e   : > { %s53_s11 = sadd.s32 1, %s3143_s15  ;;  %p48_p1 = scmp.ge.s32.totalorder %s46_s20, 2 }
  0x6f   : > { %p60_p3 = scmp.ne.s32.totalorder %s3143_s15, %s3139_s14  ;;  %p61_p11 = scmp.eq.s32.totalorder %s3155_s18, 0 }
  0x70   : > { %p66_p12 = scmp.ne.s32.totalorder %s3139_s14, %s3135_s13  ;;  %s3935_s20 = smov (%p48_p1, %s46_s20), 0 }
  0x71   : > { %3892 = sst [smem:[#allocation34_spill]] %s3935_s20  ;;  %p3371_p13 = por %p61_p11, %p60_p3 }
  0x72   : > { %p3894_p0 = scmp.eq.s32.totalorder %s3260_s19, 0  ;;  %s50_s24 = ssub.s32 %s3151_s17, %s3935_s20 }
  0x73   : > { %p267_p4 = scmp.eq.s32.totalorder %s3260_s19, 1  ;;  %p51_p7 = scmp.eq.s32.totalorder %s50_s24, 0 }
  0x74   : > { %p3377_p2 = por %p3894_p0, %p66_p12  ;;  %p273_p9 = scmp.eq.s32.totalorder %s2230_s16, 1 }
  0x75   : > { %p3384_p5 = por %p267_p4, %p60_p3  ;;  %p2645_p10 = scmp.lt.s32.totalorder %s3155_s18, 2 }
  0x76   : > { %s3895_s27 = scalar_select %p3377_p2, 1, 0 }
  0x77   : > { %s3896_s26 = scalar_select %p3384_p5, 1, 0 }
  0x78   : > { %s3390_s28 = scalar_select %p51_p7, %s3143_s15, %s53_s11  }
  0x79   : > { %p3392_p1 = por %p273_p9, %p66_p12  ;;  %s406_s25 = sand.u32 1, %s3155_s18  }
  0x7a   : > { %3897 = sst [smem:[#allocation35_spill]] %s3390_s28  ;;  %s408_s9 = sand.u32 1, %s3143_s15  }
  0x7b   : > { %s3898_s22 = scalar_select %p3392_p1, 1, 0 }
  0x7c   : > { %s2240_s10 = sshll.u32 %s408_s9, 3  ;;  %s2241_s29 = sshll.u32 %s3151_s17, 7 }
  0x7d   : > { %s3899_s0 = sld [smem:[#allocation36_spill]]  ;;  %s410_s16 = scalar_lea.vmem [#allocation4], %s2240_s10 }
  0x7e   : > { %s417_s11 = sshll.u32 %s410_s16, 4  ;;  %p3406_p3 = pnand %p2645_p10, %p3371_p13  ;;  %s3410_s11 = int_to_ptr.vmem [resolvable:$true] %s417_s11 }
  0x7f   : > { %s3412_s5 = sshll.u32 %s408_s9, 2  ;;  %s3414_s1 = scalar_lea.sflag [#allocation5], %s406_s25 }
  0x80   : > { %s3900_s3 = scalar_select %p3406_p3, 1, 0 }
  0x81   : > { %p3870_p12 = pneg %p3406_p3 }
  0x83   : > { %s3402_s24 = scalar_lea.hbm %s3899_s0, %s2241_s29  ;;  %s2854_s10 = scalar_lea.hbm %s3899_s0, 256 }
  0x84   : > { %s2849_s29 = scalar_lea.hbm %s3402_s24, 128  ;;  %p2855_p13 = scmp.lt.u32.totalorder %s3402_s24, %s3899_s0 }
  0x85   : > { %p2850_p11 = scmp.ne.s32.totalorder %s3402_s24, %s2849_s29  ;;  %p2856_p7 = scmp.lt.u32.totalorder %s2854_s10, %s2849_s29 }
  0x86   : > { %p2858_p10 = scmp.lt.u32.totalorder %s2849_s29, %s3402_s24 }
  0x87   : > { %p2852_p0 = pnand %p3870_p12, %p2850_p11  ;;  %p2857_p9 = por %p2856_p7, %p2855_p13 }
  0x89   : > { %p2853_p4 = pneg %p2852_p0  ;;  %p2859_p1 = por %p2858_p10, %p2857_p9 }
  0x8b   : > { %p2860_p5 = pnand %p2859_p1, %p2853_p4 }
  0x8d   : > { %2863 = shalt.err (!%p2860_p5)
}
  0x8e   : > { %s2864_s25 = scalar_lea.vmem %s3410_s11, 128  ;;  %s3162_s9 = smov [#allocation4]  }
  0x8f   : > { %p2865_p11 = scmp.ne.s32.totalorder %s3410_s11, %s2864_s25  ;;  %s2869_s30 = sshll.u32 %s3162_s9, 4  ;;  %s2870_s30 = int_to_ptr.vmem [resolvable:$false] %s2869_s30 }
  0x90   : > { %s2871_s20 = scalar_lea.vmem %s2870_s30, 256  ;;  %p2872_p6 = scmp.lt.s32.totalorder %s3410_s11, %s2870_s30 }
  0x91   : > { %p2867_p0 = pnand %p2865_p11, %p3870_p12  ;;  %p2873_p13 = scmp.lt.s32.totalorder %s2871_s20, %s2864_s25 }
  0x93   : > { %p2868_p2 = pneg %p2867_p0  ;;  %p2874_p7 = por %p2873_p13, %p2872_p6 }
  0x95   : > { %p2875_p9 = pnand %p2874_p7, %p2868_p2 }
  0x97   : > { %2878 = shalt.err (!%p2875_p9)
}
  0x98   : > { %2627 = dma.hbm_to_vmem [thread:$0]  (!%p3406_p3), %s3402_s24, 128, %s3410_s11, %s3414_s1  }
  0x99   : > { %s3163_s29 = smov [#allocation9]   ;;  %s3164_s10 = smov [#allocation12]  }
  0x9a   : > { %s333_s12 = sshll.u32 %s3163_s29, 4  ;;  %s359_s16 = sshll.u32 %s3164_s10, 4  ;;  %s334_s12 = int_to_ptr.vmem [resolvable:$true] %s333_s12  ;;  %s360_s16 = int_to_ptr.vmem [resolvable:$true] %s359_s16 }
  0x9b   : > { %s3901_s2 = sld [smem:[#allocation38_spill]] }
  0xa1   : > { %s2879_s30 = scalar_lea.hbm %s3901_s2, 1024 }
  0xa2   : > { %p2880_p6 = scmp.ne.s32.totalorder %s3901_s2, %s2879_s30  ;;  %p2886_p1 = scmp.lt.u32.totalorder %s2879_s30, %s3901_s2 }
  0xa4   : > { %p2882_p2 = pnand %p2880_p6, %p3292_p8 }
  0xa6   : > { %p2883_p5 = pneg %p2882_p2 }
  0xa8   : > { %p2888_p4 = pnand %p2886_p1, %p2883_p5 }
  0xaa   : > { %2891 = shalt.err (!%p2888_p4)
}
  0xab   : > { %s2892_s24 = scalar_lea.vmem %s334_s12, 1024  ;;  %p2900_p13 = scmp.lt.s32.totalorder %s334_s12, %s334_s12 }
  0xac   : > { %p2893_p10 = scmp.ne.s32.totalorder %s334_s12, %s2892_s24  ;;  %p2901_p7 = scmp.lt.s32.totalorder %s2892_s24, %s2892_s24 }
  0xae   : > { %p2895_p11 = pnand %p2893_p10, %p3292_p8  ;;  %p2902_p9 = por %p2901_p7, %p2900_p13 }
  0xb0   : > { %p2896_p0 = pneg %p2895_p11 }
  0xb2   : > { %p2903_p12 = pnand %p2902_p9, %p2896_p0 }
  0xb4   : > { %2906 = shalt.err (!%p2903_p12)
}
  0xb5   : > { %p3902_p6 = scmp.ne.s32.totalorder %s3887_s23, 0  ;;  %s3903_s0 = smov 4  }
  0xb6   : > { %s3904_s11 = smov 64   ;;  %s2907_s9 = scalar_lea.hbm %s3847_s4, 1024 }
  0xb7   : > { %2608 = dma.hbm_to_vmem [thread:$0]  (!%p3902_p6), %s3901_s2, 1024, %s334_s12, [#allocation8], %s3904_s11, %s3904_s11, %s3903_s0  }
  0xb8   : > { %p2908_p2 = scmp.ne.s32.totalorder %s3847_s4, %s2907_s9  ;;  %p2914_p1 = scmp.lt.u32.totalorder %s2907_s9, %s3847_s4 }
  0xba   : > { %p2910_p12 = pnand %p2908_p2, %p3292_p8 }
  0xbc   : > { %p2911_p5 = pneg %p2910_p12 }
  0xbe   : > { %p2916_p4 = pnand %p2914_p1, %p2911_p5 }
  0xc0   : > { %2919 = shalt.err (!%p2916_p4)
}
  0xc1   : > { %s2920_s15 = scalar_lea.vmem %s360_s16, 1024  ;;  %p2928_p13 = scmp.lt.s32.totalorder %s360_s16, %s360_s16 }
  0xc2   : > { %p2921_p10 = scmp.ne.s32.totalorder %s360_s16, %s2920_s15  ;;  %p2929_p7 = scmp.lt.s32.totalorder %s2920_s15, %s2920_s15 }
  0xc4   : > { %p2923_p11 = pnand %p2921_p10, %p3292_p8  ;;  %p2930_p9 = por %p2929_p7, %p2928_p13 }
  0xc6   : > { %p2924_p0 = pneg %p2923_p11 }
  0xc8   : > { %p2931_p3 = pnand %p2930_p9, %p2924_p0 }
  0xca   : > { %2934 = shalt.err (!%p2931_p3)
}
  0xcb   : > { %2614 = dma.hbm_to_vmem [thread:$0]  (!%p3902_p6), %s3847_s4, 1024, %s360_s16, [#allocation11], %s3904_s11, %s3904_s11, %s3903_s0  }
  0xcc   : > { %s3165_s29 = smov [#allocation15]   ;;  %s3166_s9 = smov [#allocation16]  }
  0xcd   : > { %s384_s10 = sshll.u32 %s3165_s29, 4  ;;  %s395_s30 = sshll.u32 %s3166_s9, 4  ;;  %s385_s10 = int_to_ptr.vmem [resolvable:$true] %s384_s10  ;;  %s396_s30 = int_to_ptr.vmem [resolvable:$true] %s395_s30 }
  0xce   : > { %s2935_s24 = scalar_lea.hbm %s3849_s6, 16 }
  0xcf   : > { %p2936_p3 = scmp.ne.s32.totalorder %s3849_s6, %s2935_s24  ;;  %p2942_p5 = scmp.lt.u32.totalorder %s2935_s24, %s3849_s6 }
  0xd1   : > { %p2938_p2 = pnand %p2936_p3, %p3292_p8 }
  0xd3   : > { %p2939_p12 = pneg %p2938_p2 }
  0xd5   : > { %p2944_p1 = pnand %p2942_p5, %p2939_p12 }
  0xd7   : > { %2947 = shalt.err (!%p2944_p1)
}
  0xd8   : > { %s2948_s16 = scalar_lea.vmem %s385_s10, 16  ;;  %s2955_s0 = scalar_lea.vmem %s385_s10, 32 }
  0xd9   : > { %p2949_p4 = scmp.ne.s32.totalorder %s385_s10, %s2948_s16  ;;  %p2956_p0 = scmp.lt.s32.totalorder %s385_s10, %s385_s10 }
  0xda   : > { %p2957_p13 = scmp.lt.s32.totalorder %s2955_s0, %s2948_s16 }
  0xdb   : > { %p2951_p10 = pnand %p2949_p4, %p3292_p8 }
  0xdc   : > { %p2958_p7 = por %p2957_p13, %p2956_p0 }
  0xdd   : > { %p2952_p11 = pneg %p2951_p10 }
  0xdf   : > { %p2959_p9 = pnand %p2958_p7, %p2952_p11 }
  0xe1   : > { %2962 = shalt.err (!%p2959_p9)
}
  0xe2   : > { %2620 = dma.hbm_to_vmem [thread:$0]  (!%p3902_p6), %s3849_s6, 16, %s385_s10, [#allocation14]  }
  0xe3   : > { %s2963_s29 = scalar_lea.hbm %s3850_s7, 16 }
  0xe4   : > { %p2964_p3 = scmp.ne.s32.totalorder %s3850_s7, %s2963_s29  ;;  %p2970_p5 = scmp.lt.u32.totalorder %s2963_s29, %s3850_s7 }
  0xe6   : > { %p2966_p2 = pnand %p2964_p3, %p3292_p8 }
  0xe8   : > { %p2967_p12 = pneg %p2966_p2 }
  0xea   : > { %p2972_p1 = pnand %p2970_p5, %p2967_p12 }
  0xec   : > { %2975 = shalt.err (!%p2972_p1)
}
  0xed   : > { %s2976_s15 = scalar_lea.vmem %s396_s30, 16  ;;  %s2983_s10 = scalar_lea.vmem %s396_s30, 32 }
  0xee   : > { %p2977_p4 = scmp.ne.s32.totalorder %s396_s30, %s2976_s15  ;;  %p2984_p0 = scmp.lt.s32.totalorder %s396_s30, %s396_s30 }
  0xef   : > { %p2985_p13 = scmp.lt.s32.totalorder %s2983_s10, %s2976_s15 }
  0xf0   : > { %p2979_p10 = pnand %p2977_p4, %p3292_p8 }
  0xf1   : > { %p2986_p7 = por %p2985_p13, %p2984_p0 }
  0xf2   : > { %p2980_p11 = pneg %p2979_p10 }
  0xf4   : > { %p2987_p9 = pnand %p2986_p7, %p2980_p11 }
  0xf6   : > { %2990 = shalt.err (!%p2987_p9)
}
  0xf7   : > { %2623 = dma.hbm_to_vmem [thread:$0]  (!%p3902_p6), %s3850_s7, 16, %s396_s30, [#allocation17]  }
  0xf8   : > { %s2243_s0 = sshll.u32 %s3151_s17, 6  ;;  %s428_s2 = scalar_lea.vmem [#allocation18], %s3412_s5 }
  0xf9   : > { %s436_s21 = sshll.u32 %s428_s2, 4  ;;  %s434_s28 = scalar_lea.hbm %s3851_s8, %s2243_s0  ;;  %s437_s21 = int_to_ptr.vmem [resolvable:$true] %s436_s21 }
  0xfa   : > { %s2991_s29 = scalar_lea.hbm %s434_s28, 64  ;;  %p3905_p3 = scmp.ne.s32.totalorder %s3900_s3, 0 }
  0xfb   : > { %p2992_p8 = scmp.ne.s32.totalorder %s434_s28, %s2991_s29  ;;  %s2996_s25 = scalar_lea.hbm %s3851_s8, 128 }
  0xfc   : > { %p3906_p2 = pneg %p3905_p3  ;;  %p2997_p6 = scmp.lt.u32.totalorder %s434_s28, %s3851_s8 }
  0xfd   : > { %p2998_p1 = scmp.lt.u32.totalorder %s2996_s25, %s2991_s29  ;;  %p3000_p10 = scmp.lt.u32.totalorder %s2991_s29, %s434_s28 }
  0xfe   : > { %p2994_p12 = pnand %p2992_p8, %p3906_p2 }
  0xff   : > { %p2999_p4 = por %p2998_p1, %p2997_p6 }
 0x100   : > { %p2995_p5 = pneg %p2994_p12 }
 0x101   : > { %p3001_p11 = por %p3000_p10, %p2999_p4 }
 0x103   : > { %p3002_p0 = pnand %p3001_p11, %p2995_p5 }
 0x105   : > { %3005 = shalt.err (!%p3002_p0)
}
 0x106   : > { %s3006_s5 = scalar_lea.vmem %s437_s21, 64  ;;  %p3907_p7 = pmov %p3906_p2 }
 0x107   : > { %p3007_p13 = scmp.ne.s32.totalorder %s437_s21, %s3006_s5  ;;  %s3167_s24 = smov [#allocation18]  }
 0x108   : > { %s3011_s15 = sshll.u32 %s3167_s24, 4  ;;  %s3012_s15 = int_to_ptr.vmem [resolvable:$false] %s3011_s15 }
 0x109   : > { %p3009_p9 = pnand %p3007_p13, %p3907_p7  ;;  %s3013_s10 = scalar_lea.vmem %s3012_s15, 128 }
 0x10a   : > { %p3014_p2 = scmp.lt.s32.totalorder %s437_s21, %s3012_s15  ;;  %p3015_p12 = scmp.lt.s32.totalorder %s3013_s10, %s3006_s5 }
 0x10b   : > { %p3010_p8 = pneg %p3009_p9 }
 0x10c   : > { %p3016_p1 = por %p3015_p12, %p3014_p2 }
 0x10e   : > { %p3017_p6 = pnand %p3016_p1, %p3010_p8 }
 0x110   : > { %3020 = shalt.err (!%p3017_p6)
}
 0x111   : > { %2630 = dma.hbm_to_vmem [thread:$0]  (!%p3905_p3), %s434_s28, 64, %s437_s21, %s3414_s1  }
 0x112   : > { %s3908_s12 = sld [smem:[#allocation33_spill]] }
 0x118   : > { %p3909_p5 = scmp.ne.s32.totalorder %s3908_s12, 0 }
 0x119   : > { %s447_s16 = sand.u32 (!%p3909_p5), 1, %s3260_s19   ;;  %s3544_s0 = sand.u32 (!%p3909_p5), 1, %s3139_s14  }
 0x11a   : > { %445 = sbr.rel (%p3909_p5) target bundleno = 4107 (0x100b), region = 56  ;;  %s2245_s2 = sshll.u32 (!%p3909_p5), %s3544_s0, 3 }
 0x11b   : > { %s448_s11 = scalar_lea.sflag (!%p3909_p5), [#allocation5], %s447_s16  ;;  %s451_s18 = scalar_lea.vmem (!%p3909_p5), [#allocation4], %s2245_s2 }
 0x11c   : > { %p3910_p4 = scmp.ne.s32.totalorder (!%p3909_p5), %s3895_s27, 0 }
 0x121   : > { %3102 = dma.done.wait (%p3910_p4), %s448_s11, 128  }
 0x122   : > { %3104 = vsyncadd (%p3910_p4), %s448_s11, 4294967168  ;;  %p3911_p3 = scmp.eq.s32.totalorder %s3260_s19, 0 }
 0x124   : > { %3106 = dma.done.wait (%p3911_p3), [#allocation8], 2048   ;;  %p3912_p10 = pmov %p3911_p3 }
 0x125   : > { %p3913_p11 = pmov %p3911_p3 }
 0x126   : > { %3108 = vsyncadd (%p3912_p10), [#allocation8], 4294965248 }
 0x127   : > { %3110 = dma.done.wait (%p3913_p11), [#allocation11], 2048   ;;  %p3914_p0 = pmov %p3911_p3 }
 0x129   : > { %3112 = vsyncadd (%p3914_p0), [#allocation11], 4294965248  ;;  %p3915_p13 = pmov %p3914_p0 }
 0x12a   : > { %p3916_p7 = pmov %p3914_p0 }
 0x12b   : > { %3114 = dma.done.wait (%p3915_p13), [#allocation14], 32  }
 0x12c   : > { %3116 = vsyncadd (%p3916_p7), [#allocation14], 4294967264  ;;  %p3917_p9 = pmov %p3914_p0 }
 0x12d   : > { %p3918_p8 = pmov %p3914_p0 }
 0x12e   : > { %3118 = dma.done.wait (%p3917_p9), [#allocation17], 16  }
 0x12f   : > { %3120 = vsyncadd (%p3918_p8), [#allocation17], 4294967280  ;;  %s2253_s3 = sshll.u32 %s3544_s0, 2 }
 0x130   : > { %s3570_s1 = scalar_lea.vmem [#allocation18], %s2253_s3 }
 0x131   : > { %3122 = dma.done.wait (%p3910_p4), %s448_s11, 64  }
 0x132   : > { %3124 = vsyncadd (%p3910_p4), %s448_s11, 4294967232  ;;  %v3168_v0 = vmov 0.0   ;;  %vm3169_vm0 = vmmov 0   ;;  %v2715_v1 = vld [vmem:[#allocation9] sm:$0xff]   ;;  %v2716_v2 = vld [vmem:[#allocation9 + $0x8] sm:$0xff]   ;;  %vm558_vm1 = vcmask 261120  }
 0x133   : > { %2390 = vmatprep.subr.bf16.mxu0 %v3168_v0  ;;  %2394 = vmatprep.mubr.msk.bf16.mxu0 %vm3169_vm0, %v3168_v0  ;;  %v3582_v3 = vld [vmem:[%s451_s18] sm:$0xff]  ;;  %v2725_v7 = vld [vmem:[#allocation10] sm:$0xff]   ;;  %v2726_v8 = vld [vmem:[#allocation10 + $0x8] sm:$0xff]   ;;  %vm603_vm2 = vcmask 257024   ;;  %vm1156_vm3 = vcmask 1043456   ;;  %vm1137_vm4 = vcmask 64512  }
 0x134   : > { %2398 = vmatprep.subr.bf16.mxu1 %v3168_v0  ;;  %2402 = vmatprep.mubr.msk.bf16.mxu1 %vm3169_vm0, %v3168_v0  ;;  %v3587_v4 = vpack.c.bf16 %v3582_v3, %v3582_v3  ;;  %v2717_v5 = vld [vmem:[#allocation9 + $0x10] sm:$0xff]   ;;  %v2718_v6 = vld [vmem:[#allocation9 + $0x18] sm:$0xff]   ;;  %v2719_v9 = vld [vmem:[#allocation9 + $0x20] sm:$0xff]   ;;  %s2255_s19 = sshll.u32 %s3544_s0, 4  ;;  %vm1150_vm5 = vcmask 60416   ;;  %s3919_s21 = sld [smem:[#allocation31_spill]] }
 0x135   : > { %2391 = vmatpush3.bf16.msra.mxu0 %v2715_v1  ;;  %2399 = vmatpush3.bf16.msra.mxu1 %v2725_v7  ;;  %v2720_v10 = vld [vmem:[#allocation9 + $0x28] sm:$0xff]   ;;  %v2727_v11 = vld [vmem:[#allocation10 + $0x10] sm:$0xff]   ;;  %v2728_v12 = vld [vmem:[#allocation10 + $0x18] sm:$0xff]   ;;  %s3672_s27 = scalar_lea.vmem [#allocation20], %s2255_s19  ;;  %s3920_s25 = sld [smem:[#allocation42_spill]] }
 0x136   : > { %2392 = vmatprep.subr.bf16.mxu0 %v3168_v0  ;;  %2400 = vmatprep.subr.bf16.mxu1 %v3168_v0  ;;  %v2721_v13 = vld [vmem:[#allocation9 + $0x30] sm:$0xff]   ;;  %v2729_v14 = vld [vmem:[#allocation10 + $0x20] sm:$0xff]   ;;  %v2722_v15 = vld [vmem:[#allocation9 + $0x38] sm:$0xff]   ;;  %s2023_s29 = sshll.u32 %s3672_s27, 4  ;;  %s1995_s30 = scalar_lea.sflag [#allocation21], %s3544_s0  ;;  %s3761_s29 = int_to_ptr.vmem [resolvable:$true] %s2023_s29 }
 0x137   : > { %v2730_v16 = vld [vmem:[#allocation10 + $0x28] sm:$0xff]   ;;  %v2723_v17 = vld [vmem:[#allocation7] sm:$0xff]   ;;  %v2731_v19 = vld [vmem:[#allocation10 + $0x30] sm:$0xff]   ;;  %s3021_s5 = scalar_lea.vmem %s3761_s29, 256  ;;  %p3921_p12 = scmp.ne.s32.totalorder %s3896_s26, 0 }
 0x138   : > { %v2724_v18 = vld [vmem:[#allocation7 + $0x8] sm:$0xff]   ;;  %v2732_v20 = vld [vmem:[#allocation10 + $0x38] sm:$0xff]   ;;  %v2733_v61 = vld [vmem:[#allocation7 + $0x10] sm:$0xff]   ;;  %p3022_p2 = scmp.ne.s32.totalorder %s3761_s29, %s3021_s5  ;;  %s3170_s24 = smov [#allocation20]  }
 0x139   : > { %2393 = vmatpush3.bf16.msra.mxu0 %v2716_v2  ;;  %2401 = vmatpush3.bf16.msra.mxu1 %v2726_v8  ;;  %s3025_s15 = sshll.u32 %s3170_s24, 4  ;;  %s3026_s15 = int_to_ptr.vmem [resolvable:$false] %s3025_s15 }
 0x13a   : > { %2406 = vmatprep.subr.bf16.mxu0 %v3168_v0  ;;  %2414 = vmatprep.subr.bf16.mxu1 %v3168_v0  ;;  %s2325_s28 = sshll.u32 %s3919_s21, 8  ;;  %p3023_p1 = pnand %p3022_p2, %p3921_p12 }
 0x13b   : > { %s3759_s20 = scalar_lea.hbm %s3920_s25, %s2325_s28  ;;  %s3027_s10 = scalar_lea.vmem %s3026_s15, 512 }
 0x13c   : > { %2395 = vmatmul.mubr.msk.bf16.vlgmr.msra.gmra.mrb[0].mxu0 %vm558_vm1, %v3587_v4  ;;  %2403 = vmatmul.mubr.msk.bf16.vlgmr.msra.gmra.mrb[0].mxu1 %vm558_vm1, %v3587_v4  ;;  %p3024_p6 = pneg %p3023_p1  ;;  %p3028_p5 = scmp.lt.s32.totalorder %s3761_s29, %s3026_s15 }
 0x13d   : > { %2407 = vmatpush3.bf16.msra.mxu0 %v2717_v5  ;;  %2410 = vmatprep.mubr.msk.bf16.mxu0 %vm3169_vm0, %v3168_v0  ;;  %v2734_v5 = vld [vmem:[#allocation7 + $0x18] sm:$0xff]   ;;  %p3029_p4 = scmp.lt.s32.totalorder %s3027_s10, %s3021_s5 }
 0x13e   : > { %2408 = vmatprep.subr.bf16.mxu0 %v3168_v0  ;;  %2415 = vmatpush3.bf16.msra.mxu1 %v2727_v11 }
 0x13f   : > { %2418 = vmatprep.mubr.msk.bf16.mxu1 %vm3169_vm0, %v3168_v0  ;;  %2416 = vmatprep.subr.bf16.mxu1 %v3168_v0  ;;  %p3030_p3 = por %p3029_p4, %p3028_p5 }
 0x141   : > { %2409 = vmatpush3.bf16.msra.mxu0 %v2718_v6  ;;  %p3031_p10 = pnand %p3030_p3, %p3024_p6 }
 0x142   : > { %2422 = vmatprep.subr.bf16.mxu0 %v3168_v0  ;;  %2417 = vmatpush3.bf16.msra.mxu1 %v2728_v12 }
 0x143   : > { %2430 = vmatprep.subr.bf16.mxu1 %v3168_v0 }
 0x144   : > { %2411 = vmatmul.mubr.msk.bf16.vlgmr.msra.gmra.mrb[4].mxu0 %vm558_vm1, %v3587_v4 }
 0x145   : > { %2423 = vmatpush3.bf16.msra.mxu0 %v2719_v9  ;;  %2426 = vmatprep.mubr.msk.bf16.mxu0 %vm3169_vm0, %v3168_v0 }
 0x146   : > { %2424 = vmatprep.subr.bf16.mxu0 %v3168_v0  ;;  %2419 = vmatmul.mubr.msk.bf16.vlgmr.msra.gmra.mrb[4].mxu1 %vm558_vm1, %v3587_v4 }
 0x147   : > { %2431 = vmatpush3.bf16.msra.mxu1 %v2729_v14  ;;  %2434 = vmatprep.mubr.msk.bf16.mxu1 %vm3169_vm0, %v3168_v0 }
 0x148   : > { %2432 = vmatprep.subr.bf16.mxu1 %v3168_v0 }
 0x149   : > { %2425 = vmatpush3.bf16.msra.mxu0 %v2720_v10 }
 0x14a   : > { %2438 = vmatprep.subr.bf16.mxu0 %v3168_v0 }
 0x14b   : > { %2433 = vmatpush3.bf16.msra.mxu1 %v2730_v16 }
 0x14c   : > { %2427 = vmatmul.mubr.msk.bf16.vlgmr.msra.gmra.mrb[8].mxu0 %vm558_vm1, %v3587_v4  ;;  %2446 = vmatprep.subr.bf16.mxu1 %v3168_v0 }
 0x14d   : > { %2439 = vmatpush3.bf16.msra.mxu0 %v2721_v13  ;;  %2442 = vmatprep.mubr.msk.bf16.mxu0 %vm3169_vm0, %v3168_v0  ;;  %v1027_v13 = vld [vmem:[%s3570_s1] sm:$0xf] }
 0x14e   : > { %2440 = vmatprep.subr.bf16.mxu0 %v3168_v0  ;;  %2435 = vmatmul.mubr.msk.bf16.vlgmr.msra.gmra.mrb[8].mxu1 %vm558_vm1, %v3587_v4  ;;  %v3666_v14 = vunpack.c.l.bf16 %v1027_v13 }
 0x14f   : > { %2450 = vmatprep.mubr.msk.bf16.mxu1 %vm3169_vm0, %v3168_v0  ;;  %2447 = vmatpush3.bf16.msra.mxu1 %v2731_v19 }
 0x150   : > { %2448 = vmatprep.subr.bf16.mxu1 %v3168_v0 }
 0x151   : > { %2441 = vmatpush3.bf16.msra.mxu0 %v2722_v15 }
 0x152   : > { %2454 = vmatprep.subr.bf16.mxu0 %v3168_v0 }
 0x153   : > { %2449 = vmatpush3.bf16.msra.mxu1 %v2732_v20 }
 0x154   : > { %2443 = vmatmul.mubr.msk.bf16.vlgmr.msra.gmra.mrb[12].mxu0 %vm558_vm1, %v3587_v4  ;;  %2462 = vmatprep.subr.bf16.mxu1 %v3168_v0 }
 0x155   : > { %2455 = vmatpush3.bf16.msra.mxu0 %v2723_v17  ;;  %2458 = vmatprep.mubr.msk.bf16.mxu0 %vm3169_vm0, %v3168_v0 }
 0x156   : > { %2456 = vmatprep.subr.bf16.mxu0 %v3168_v0  ;;  %2451 = vmatmul.mubr.msk.bf16.vlgmr.msra.gmra.mrb[12].mxu1 %vm558_vm1, %v3587_v4 }
 0x157   : > { %2464 = vmatprep.mubr.msk.bf16.mxu1 %vm3169_vm0, %v3168_v0 }
 0x159   : > { %2457 = vmatpush3.bf16.msra.mxu0 %v2724_v18 }
 0x15a   : > { %2468 = vmatprep.subr.bf16.mxu0 %v3168_v0 }
 0x15c   : > { %2459 = vmatmul.mubr.msk.bf16.vlgmr.msra.gmra.mrb[16].mxu0 %vm558_vm1, %v3587_v4 }
 0x15d   : > { %2470 = vmatprep.mubr.msk.bf16.mxu0 %vm3169_vm0, %v3168_v0 }
 0x20f   : > { %v596_v21 = vpop.f32.mrb[0].mxu0  ;;  %v655_v33 = vpop.f32.mrb[0].mxu1 }
 0x210   : > { %v602_v22 = vpack.c.bf16 %v596_v21, %v596_v21  ;;  %v2396_v23 = vpop.f32.mrb[1].mxu0  ;;  %v661_v34 = vpack.c.bf16 %v655_v33, %v655_v33  ;;  %v2404_v35 = vpop.f32.mrb[1].mxu1 }
 0x211   : > { %v599_v24 = vpop.f32.mrb[2].mxu0  ;;  %v658_v36 = vpop.f32.mrb[2].mxu1 }
 0x212   : > { %604 = vst.msk [vmem:[#allocation2] sm:$0xf] %vm603_vm2, %v602_v22  ;;  %v2397_v25 = vpop.f32.mrb[3].mxu0  ;;  %662 = vst.msk [vmem:[#allocation3] sm:$0xf] %vm603_vm2, %v661_v34  ;;  %v2405_v37 = vpop.f32.mrb[3].mxu1 }
 0x217   : > { %v714_v26 = vpop.f32.mrb[4].mxu0 }
 0x218   : > { %v720_v27 = vpack.c.bf16 %v714_v26, %v714_v26  ;;  %v2412_v28 = vpop.f32.mrb[5].mxu0 }
 0x219   : > { %v717_v29 = vpop.f32.mrb[6].mxu0  ;;  %v1090_v30 = vld [vmem:[#allocation2] sm:$0xf]  ;;  %v774_v43 = vpop.f32.mrb[4].mxu1  ;;  %v1152_v47 = vld [vmem:[#allocation3] sm:$0xf] }
 0x21a   : > { %722 = vst.msk [vmem:[#allocation2 + $0x4] sm:$0xf] %vm603_vm2, %v720_v27  ;;  %v2413_v31 = vpop.f32.mrb[7].mxu0  ;;  %v1095_v32 = vsel %vm558_vm1, %v1090_v30, 0  ;;  %v780_v44 = vpack.c.bf16 %v774_v43, %v774_v43  ;;  %v2420_v45 = vpop.f32.mrb[5].mxu1  ;;  %v1158_v49 = vsel %vm1156_vm3, %v1152_v47, 0 }
 0x21b   : > { %2463 = vmatpush3.bf16.xpose.msra.mxu1 %v1095_v32  ;;  %v777_v46 = vpop.f32.mrb[6].mxu1  ;;  %2469 = vmatpush3.bf16.msra.mxu0 %v1158_v49 }
 0x21c   : > { %2474 = vmatprep.subr.bf16.mxu1 %v3168_v0  ;;  %782 = vst.msk [vmem:[#allocation3 + $0x4] sm:$0xf] %vm603_vm2, %v780_v44  ;;  %v2421_v48 = vpop.f32.mrb[7].mxu1  ;;  %2482 = vmatprep.subr.bf16.mxu0 %v3168_v0 }
 0x21f   : > { %v834_v38 = vpop.f32.mrb[8].mxu0 }
 0x220   : > { %v840_v39 = vpack.c.bf16 %v834_v38, %v834_v38  ;;  %v2428_v40 = vpop.f32.mrb[9].mxu0 }
 0x221   : > { %v837_v41 = vpop.f32.mrb[10].mxu0  ;;  %v894_v55 = vpop.f32.mrb[8].mxu1  ;;  %v1264_v33 = vld [vmem:[#allocation2 + $0x4] sm:$0xf] }
 0x222   : > { %842 = vst.msk [vmem:[#allocation2 + $0x8] sm:$0xf] %vm603_vm2, %v840_v39  ;;  %v2429_v42 = vpop.f32.mrb[11].mxu0  ;;  %v900_v56 = vpack.c.bf16 %v894_v55, %v894_v55  ;;  %v2436_v57 = vpop.f32.mrb[9].mxu1  ;;  %v1269_v35 = vsel %vm558_vm1, %v1264_v33, 0 }
 0x223   : > { %v897_v58 = vpop.f32.mrb[10].mxu1  ;;  %v1326_v6 = vld [vmem:[#allocation3 + $0x4] sm:$0xf] }
 0x224   : > { %902 = vst.msk [vmem:[#allocation3 + $0x8] sm:$0xf] %vm603_vm2, %v900_v56  ;;  %v2437_v59 = vpop.f32.mrb[11].mxu1  ;;  %v1331_v7 = vsel %vm1156_vm3, %v1326_v6, 0  ;;  %v2735_v57 = vld [vmem:[#allocation12] sm:$0xff]  }
 0x225   : > { %v2736_v59 = vld [vmem:[#allocation12 + $0x8] sm:$0xff]  }
 0x227   : > { %v954_v50 = vpop.f32.mrb[12].mxu0 }
 0x228   : > { %v960_v51 = vpack.c.bf16 %v954_v50, %v954_v50  ;;  %v2444_v52 = vpop.f32.mrb[13].mxu0 }
 0x229   : > { %v957_v53 = vpop.f32.mrb[14].mxu0  ;;  %v1014_v8 = vpop.f32.mrb[12].mxu1  ;;  %v2737_v52 = vld [vmem:[#allocation12 + $0x10] sm:$0xff]  }
 0x22a   : > { %962 = vst.msk [vmem:[#allocation2 + $0xc] sm:$0xf] %vm603_vm2, %v960_v51  ;;  %v2445_v54 = vpop.f32.mrb[15].mxu0  ;;  %v1020_v9 = vpack.c.bf16 %v1014_v8, %v1014_v8  ;;  %v2452_v10 = vpop.f32.mrb[13].mxu1  ;;  %v2738_v53 = vld [vmem:[#allocation12 + $0x18] sm:$0xff]   ;;  %v2740_v8 = vld [vmem:[#allocation7 + $0x28] sm:$0xff]  }
 0x22b   : > { %v1017_v11 = vpop.f32.mrb[14].mxu1  ;;  %v1610_v10 = vld [vmem:[#allocation3 + $0x8] sm:$0xf] }
 0x22c   : > { %1022 = vst.msk [vmem:[#allocation3 + $0xc] sm:$0xf] %vm603_vm2, %v1020_v9  ;;  %v2453_v12 = vpop.f32.mrb[15].mxu1 }
 0x22f   : > { %v1083_v60 = vpop.f32.mrb[16].mxu0 }
 0x230   : > { %v1089_v62 = vpack.c.bf16 %v1083_v60, %v1083_v60  ;;  %v2460_v63 = vpop.f32.mrb[17].mxu0 }
 0x231   : > { %v1086_v1 = vpop.f32.mrb[18].mxu0 }
 0x232   : > { %v2461_v2 = vpop.f32.mrb[19].mxu0  ;;  %2465 = vmatmul.mubr.msk.bf16.vlgmr.msra.gmra.mrb[16].mxu1 %vm558_vm1, %v1089_v62  ;;  %v2739_v1 = vld [vmem:[#allocation7 + $0x20] sm:$0xff]  }
 0x233   : > { %2475 = vmatpush3.bf16.msra.mxu1 %v2733_v61  ;;  %2478 = vmatprep.mubr.msk.bf16.mxu1 %vm3169_vm0, %v3168_v0  ;;  %v1548_v61 = vld [vmem:[#allocation2 + $0x8] sm:$0xf] }
 0x234   : > { %2476 = vmatprep.subr.bf16.mxu1 %v3168_v0  ;;  %v1553_v62 = vsel %vm558_vm1, %v1548_v61, 0 }
 0x237   : > { %2477 = vmatpush3.bf16.msra.mxu1 %v2734_v5 }
 0x238   : > { %2488 = vmatprep.subr.bf16.mxu1 %v3168_v0 }
 0x23a   : > { %2479 = vmatmul.mubr.msk.bf16.vlgmr.msra.gmra.mrb[20].mxu1 %vm558_vm1, %v3587_v4 }
 0x23b   : > { %2489 = vmatpush3.bf16.msra.mxu1 %v1331_v7  ;;  %2490 = vmatprep.mubr.msk.bf16.mxu1 %vm3169_vm0, %v3168_v0 }
 0x23c   : > { %2502 = vmatprep.subr.bf16.mxu1 %v3168_v0 }
 0x305   : > { %v1131_v15 = vpop.f32.mrb[16].mxu1 }
 0x306   : > { %v1132_v16 = vadd.f32 %v1131_v15, %v3666_v14  ;;  %v2466_v17 = vpop.f32.mrb[17].mxu1  ;;  %v1615_v15 = vsel %vm1156_vm3, %v1610_v10, 0 }
 0x307   : > { %v1134_v18 = vpop.f32.mrb[18].mxu1 }
 0x308   : > { %v2467_v19 = vpop.f32.mrb[19].mxu1  ;;  %v1138_v20 = vsel %vm1137_vm4, %v1132_v16, -inf }
 0x309   : > { %1139 = vmax.xlane.f32.xlu0 %v1138_v20 }
 0x30d   : > { %v1256_v26 = vpop.f32.mrb[20].mxu1 }
 0x30e   : > { %v2480_v27 = vpop.f32.mrb[21].mxu1  ;;  %v1262_v36 = vpack.c.bf16 %v1256_v26, %v1256_v26 }
 0x30f   : > { %v1259_v28 = vpop.f32.mrb[22].mxu1 }
 0x310   : > { %v2481_v29 = vpop.f32.mrb[23].mxu1 }
 0x396   : > { %v1140_v21 = vpop.xlane.xlu0 %1139 }
 0x397   : > { %v1141_v22 = vsub.f32 %v1132_v16, %v1140_v21 }
 0x399   : > { %v1142_v23 = vmul.f32 1.442695, %v1141_v22 }
 0x39b   : > { %2747 = vpow2.f32 %v1142_v23 }
 0x3a5   : > { %v2748_v24 = vpop.eup %2747 }
 0x3a6   : > { %v1144_v25 = vsel %vm1137_vm4, %v2748_v24, 0.0 }
 0x3a7   : > { %1145 = vadd.xlane.f32.xlu0 %v1144_v25 }
 0x434   : > { %v1146_v30 = vpop.xlane.xlu0 %1145 }
 0x435   : > { %2749 = vrcp.f32 %v1146_v30 }
 0x43f   : > { %v2750_v31 = vpop.eup %2749 }
 0x440   : > { %v1148_v32 = vmul.f32 %v2750_v31, %v2748_v24 }
 0x442   : > { %v1149_v34 = vpack.c.bf16 %v1148_v32, %v1148_v32 }
 0x444   : > { %1151 = vst.msk [vmem:[%s3672_s27] sm:$0xf] %vm1150_vm5, %v1149_v34  ;;  %2471 = vmatmul.mubr.msk.bf16.vlgmr.msra.gmra.mrb[20].mxu0 %vm1137_vm4, %v1149_v34 }
 0x445   : > { %2483 = vmatpush3.bf16.xpose.msra.mxu0 %v1269_v35  ;;  %2484 = vmatprep.mubr.msk.bf16.mxu0 %vm3169_vm0, %v3168_v0 }
 0x446   : > { %2494 = vmatprep.subr.bf16.mxu0 %v3168_v0 }
 0x44c   : > { %2485 = vmatmul.mubr.msk.bf16.vlgmr.msra.gmra.mrb[24].mxu0 %vm558_vm1, %v1262_v36 }
 0x44d   : > { %2498 = vmatprep.mubr.msk.bf16.mxu0 %vm3169_vm0, %v3168_v0  ;;  %2495 = vmatpush3.bf16.msra.mxu0 %v2737_v52 }
 0x44e   : > { %2496 = vmatprep.subr.bf16.mxu0 %v3168_v0 }
 0x451   : > { %2497 = vmatpush3.bf16.msra.mxu0 %v2738_v53 }
 0x452   : > { %2510 = vmatprep.subr.bf16.mxu0 %v3168_v0 }
 0x517   : > { %v1194_v37 = vpop.f32.mrb[20].mxu0 }
 0x518   : > { %v2472_v38 = vpop.f32.mrb[21].mxu0  ;;  %v1200_v60 = vpack.c.bf16 %v1194_v37, %v1194_v37  ;;  %v2743_v37 = vld [vmem:[#allocation12 + $0x20] sm:$0xff]  }
 0x519   : > { %v1197_v39 = vpop.f32.mrb[22].mxu0  ;;  %v2744_v38 = vld [vmem:[#allocation12 + $0x28] sm:$0xff]  }
 0x51a   : > { %v2473_v40 = vpop.f32.mrb[23].mxu0 }
 0x51f   : > { %v1305_v41 = vpop.f32.mrb[24].mxu0 }
 0x520   : > { %v1306_v42 = vadd.f32 %v1305_v41, %v3666_v14  ;;  %v2486_v43 = vpop.f32.mrb[25].mxu0 }
 0x521   : > { %v1308_v44 = vpop.f32.mrb[26].mxu0 }
 0x522   : > { %v2487_v45 = vpop.f32.mrb[27].mxu0  ;;  %v1311_v46 = vsel %vm1137_vm4, %v1306_v42, -inf  ;;  %v2742_v44 = vld [vmem:[#allocation7 + $0x38] sm:$0xff]  }
 0x523   : > { %1312 = vmax.xlane.f32.xlu1 %v1311_v46  ;;  %v1840_v45 = vld [vmem:[#allocation3 + $0xc] sm:$0xf] }
 0x524   : > { %v1845_v46 = vsel %vm1156_vm3, %v1840_v45, 0 }
 0x5b0   : > { %v1313_v47 = vpop.xlane.xlu1 %1312 }
 0x5b1   : > { %v1314_v48 = vsub.f32 %v1306_v42, %v1313_v47  ;;  %v2741_v42 = vld [vmem:[#allocation7 + $0x30] sm:$0xff]  }
 0x5b3   : > { %v1315_v49 = vmul.f32 1.442695, %v1314_v48  ;;  %v1778_v48 = vld [vmem:[#allocation2 + $0xc] sm:$0xf] }
 0x5b4   : > { %v1783_v53 = vsel %vm558_vm1, %v1778_v48, 0 }
 0x5b5   : > { %2751 = vpow2.f32 %v1315_v49 }
 0x5bf   : > { %v2752_v50 = vpop.eup %2751 }
 0x5c0   : > { %v1317_v51 = vsel %vm1137_vm4, %v2752_v50, 0.0 }
 0x5c1   : > { %1318 = vadd.xlane.f32.xlu1 %v1317_v51 }
 0x64e   : > { %v1319_v54 = vpop.xlane.xlu1 %1318 }
 0x64f   : > { %2753 = vrcp.f32 %v1319_v54 }
 0x659   : > { %v2754_v55 = vpop.eup %2753 }
 0x65a   : > { %v1321_v56 = vmul.f32 %v2754_v55, %v2752_v50 }
 0x65c   : > { %v1322_v58 = vpack.c.bf16 %v1321_v56, %v1321_v56 }
 0x65e   : > { %2289 = vst.msk [vmem:[%s3672_s27 + $0x4] sm:$0xf] %vm1150_vm5, %v1322_v58  ;;  %2491 = vmatmul.mubr.msk.bf16.vlgmr.msra.gmra.mrb[24].mxu1 %vm1137_vm4, %v1322_v58 }
 0x65f   : > { %2503 = vmatpush3.bf16.msra.mxu1 %v2735_v57  ;;  %2506 = vmatprep.mubr.msk.bf16.mxu1 %vm3169_vm0, %v3168_v0 }
 0x660   : > { %2504 = vmatprep.subr.bf16.mxu1 %v3168_v0 }
 0x663   : > { %2505 = vmatpush3.bf16.msra.mxu1 %v2736_v59 }
 0x664   : > { %2518 = vmatprep.subr.bf16.mxu1 %v3168_v0 }
 0x666   : > { %2507 = vmatmul.mubr.msk.bf16.vlgmr.msra.gmra.mrb[28].mxu1 %vm558_vm1, %v1200_v60 }
 0x667   : > { %2520 = vmatprep.mubr.msk.bf16.mxu1 %vm3169_vm0, %v3168_v0 }
 0x66c   : > { %2519 = vmatpush3.bf16.xpose.msra.mxu1 %v1553_v62 }
 0x66d   : > { %2530 = vmatprep.subr.bf16.mxu1 %v3168_v0 }
 0x731   : > { %v1367_v63 = vpop.f32.mrb[24].mxu1 }
 0x732   : > { %v1373_v2 = vpack.c.bf16 %v1367_v63, %v1367_v63  ;;  %v2492_v5 = vpop.f32.mrb[25].mxu1 }
 0x733   : > { %v1370_v6 = vpop.f32.mrb[26].mxu1 }
 0x734   : > { %v2493_v7 = vpop.f32.mrb[27].mxu1  ;;  %2499 = vmatmul.mubr.msk.bf16.vlgmr.msra.gmra.mrb[28].mxu0 %vm558_vm1, %v1373_v2 }
 0x735   : > { %2511 = vmatpush3.bf16.msra.mxu0 %v2739_v1  ;;  %2514 = vmatprep.mubr.msk.bf16.mxu0 %vm3169_vm0, %v3168_v0 }
 0x736   : > { %2512 = vmatprep.subr.bf16.mxu0 %v3168_v0 }
 0x739   : > { %2513 = vmatpush3.bf16.msra.mxu0 %v2740_v8  ;;  %v1483_v9 = vpop.f32.mrb[28].mxu1 }
 0x73a   : > { %v2508_v11 = vpop.f32.mrb[29].mxu1  ;;  %2524 = vmatprep.subr.bf16.mxu0 %v3168_v0 }
 0x73b   : > { %v1486_v12 = vpop.f32.mrb[30].mxu1 }
 0x73c   : > { %v2509_v13 = vpop.f32.mrb[31].mxu1  ;;  %2515 = vmatmul.mubr.msk.bf16.vlgmr.msra.gmra.mrb[32].mxu0 %vm558_vm1, %v3587_v4 }
 0x73d   : > { %2525 = vmatpush3.bf16.msra.mxu0 %v1615_v15  ;;  %2526 = vmatprep.mubr.msk.bf16.mxu0 %vm3169_vm0, %v3168_v0  ;;  %v2745_v13 = vld [vmem:[#allocation12 + $0x30] sm:$0xff]  }
 0x73e   : > { %2538 = vmatprep.subr.bf16.mxu0 %v3168_v0 }
 0x807   : > { %v1428_v16 = vpop.f32.mrb[28].mxu0 }
 0x808   : > { %v3712_v17 = vadd.f32 %v1483_v9, %v1428_v16  ;;  %v2500_v18 = vpop.f32.mrb[29].mxu0 }
 0x809   : > { %v1431_v19 = vpop.f32.mrb[30].mxu0  ;;  %v2746_v18 = vld [vmem:[#allocation12 + $0x38] sm:$0xff]  }
 0x80a   : > { %v2501_v20 = vpop.f32.mrb[31].mxu0 }
 0x80f   : > { %v1540_v21 = vpop.f32.mrb[32].mxu0 }
 0x810   : > { %v1546_v22 = vpack.c.bf16 %v1540_v21, %v1540_v21  ;;  %v2516_v23 = vpop.f32.mrb[33].mxu0 }
 0x811   : > { %v1543_v24 = vpop.f32.mrb[34].mxu0 }
 0x812   : > { %v2517_v25 = vpop.f32.mrb[35].mxu0  ;;  %2521 = vmatmul.mubr.msk.bf16.vlgmr.msra.gmra.mrb[32].mxu1 %vm558_vm1, %v1546_v22 }
 0x813   : > { %2534 = vmatprep.mubr.msk.bf16.mxu1 %vm3169_vm0, %v3168_v0  ;;  %2531 = vmatpush3.bf16.msra.mxu1 %v2743_v37 }
 0x814   : > { %2532 = vmatprep.subr.bf16.mxu1 %v3168_v0 }
 0x817   : > { %2533 = vmatpush3.bf16.msra.mxu1 %v2744_v38 }
 0x818   : > { %2546 = vmatprep.subr.bf16.mxu1 %v3168_v0 }
 0x8e5   : > { %v1589_v26 = vpop.f32.mrb[32].mxu1 }
 0x8e6   : > { %v1590_v27 = vadd.f32 %v1589_v26, %v3666_v14  ;;  %v2522_v28 = vpop.f32.mrb[33].mxu1 }
 0x8e7   : > { %v1592_v29 = vpop.f32.mrb[34].mxu1 }
 0x8e8   : > { %v2523_v30 = vpop.f32.mrb[35].mxu1  ;;  %v1595_v31 = vsel %vm1137_vm4, %v1590_v27, -inf }
 0x8e9   : > { %1596 = vmax.xlane.f32.xlu0 %v1595_v31 }
 0x976   : > { %v1597_v32 = vpop.xlane.xlu0 %1596 }
 0x977   : > { %v1598_v33 = vsub.f32 %v1590_v27, %v1597_v32 }
 0x979   : > { %v1599_v34 = vmul.f32 1.442695, %v1598_v33 }
 0x97b   : > { %2755 = vpow2.f32 %v1599_v34 }
 0x985   : > { %v2756_v35 = vpop.eup %2755 }
 0x986   : > { %v1601_v36 = vsel %vm1137_vm4, %v2756_v35, 0.0 }
 0x987   : > { %1602 = vadd.xlane.f32.xlu1 %v1601_v36 }
 0xa14   : > { %v1603_v39 = vpop.xlane.xlu1 %1602 }
 0xa15   : > { %2757 = vrcp.f32 %v1603_v39 }
 0xa1f   : > { %v2758_v40 = vpop.eup %2757 }
 0xa20   : > { %v1605_v41 = vmul.f32 %v2758_v40, %v2756_v35 }
 0xa22   : > { %v1606_v43 = vpack.c.bf16 %v1605_v41, %v1605_v41 }
 0xa24   : > { %2301 = vst.msk [vmem:[%s3672_s27 + $0x8] sm:$0xf] %vm1150_vm5, %v1606_v43  ;;  %2527 = vmatmul.mubr.msk.bf16.vlgmr.msra.gmra.mrb[36].mxu0 %vm1137_vm4, %v1606_v43 }
 0xa25   : > { %2539 = vmatpush3.bf16.msra.mxu0 %v2741_v42  ;;  %2542 = vmatprep.mubr.msk.bf16.mxu0 %vm3169_vm0, %v3168_v0 }
 0xa26   : > { %2540 = vmatprep.subr.bf16.mxu0 %v3168_v0 }
 0xa29   : > { %2541 = vmatpush3.bf16.msra.mxu0 %v2742_v44 }
 0xa2a   : > { %2552 = vmatprep.subr.bf16.mxu0 %v3168_v0 }
 0xa2c   : > { %2543 = vmatmul.mubr.msk.bf16.vlgmr.msra.gmra.mrb[40].mxu0 %vm558_vm1, %v3587_v4 }
 0xa2d   : > { %2553 = vmatpush3.bf16.msra.mxu0 %v1845_v46  ;;  %2554 = vmatprep.mubr.msk.bf16.mxu0 %vm3169_vm0, %v3168_v0 }
 0xaf7   : > { %v1651_v47 = vpop.f32.mrb[36].mxu0 }
 0xaf8   : > { %v1657_v49 = vpack.c.bf16 %v1651_v47, %v1651_v47  ;;  %v2528_v50 = vpop.f32.mrb[37].mxu0 }
 0xaf9   : > { %v1654_v51 = vpop.f32.mrb[38].mxu0 }
 0xafa   : > { %v2529_v52 = vpop.f32.mrb[39].mxu0  ;;  %2535 = vmatmul.mubr.msk.bf16.vlgmr.msra.gmra.mrb[36].mxu1 %vm558_vm1, %v1657_v49 }
 0xafb   : > { %2547 = vmatpush3.bf16.xpose.msra.mxu1 %v1783_v53  ;;  %2548 = vmatprep.mubr.msk.bf16.mxu1 %vm3169_vm0, %v3168_v0 }
 0xafc   : > { %2558 = vmatprep.subr.bf16.mxu1 %v3168_v0 }
 0xaff   : > { %v1770_v4 = vpop.f32.mrb[40].mxu0 }
 0xb00   : > { %v1776_v54 = vpack.c.bf16 %v1770_v4, %v1770_v4  ;;  %v2544_v55 = vpop.f32.mrb[41].mxu0 }
 0xb01   : > { %v1773_v56 = vpop.f32.mrb[42].mxu0 }
 0xb02   : > { %v2545_v57 = vpop.f32.mrb[43].mxu0  ;;  %2549 = vmatmul.mubr.msk.bf16.vlgmr.msra.gmra.mrb[40].mxu1 %vm558_vm1, %v1776_v54 }
 0xb03   : > { %2562 = vmatprep.mubr.msk.bf16.mxu1 %vm3169_vm0, %v3168_v0  ;;  %2559 = vmatpush3.bf16.msra.mxu1 %v2745_v13 }
 0xb04   : > { %2560 = vmatprep.subr.bf16.mxu1 %v3168_v0  ;;  %v2315_v0 = vld [vmem:[#allocation13] ss:$0 sm:$0xff] }
 0xb07   : > { %2561 = vmatpush3.bf16.msra.mxu1 %v2746_v18 }
 0xbcd   : > { %v1712_v58 = vpop.f32.mrb[36].mxu1 }
 0xbce   : > { %v1718_v59 = vadd.f32 %v1712_v58, %v3712_v17  ;;  %v2536_v60 = vpop.f32.mrb[37].mxu1 }
 0xbcf   : > { %v1715_v61 = vpop.f32.mrb[38].mxu1 }
 0xbd0   : > { %v2537_v62 = vpop.f32.mrb[39].mxu1 }
 0xbd5   : > { %v1819_v63 = vpop.f32.mrb[40].mxu1 }
 0xbd6   : > { %v1820_v1 = vadd.f32 %v1819_v63, %v3666_v14  ;;  %v2550_v2 = vpop.f32.mrb[41].mxu1 }
 0xbd7   : > { %v1822_v5 = vpop.f32.mrb[42].mxu1 }
 0xbd8   : > { %v2551_v6 = vpop.f32.mrb[43].mxu1  ;;  %v1825_v7 = vsel %vm1137_vm4, %v1820_v1, -inf }
 0xbd9   : > { %1826 = vmax.xlane.f32.xlu0 %v1825_v7 }
 0xc66   : > { %v1827_v8 = vpop.xlane.xlu0 %1826 }
 0xc67   : > { %v1828_v9 = vsub.f32 %v1820_v1, %v1827_v8 }
 0xc69   : > { %v1829_v10 = vmul.f32 1.442695, %v1828_v9 }
 0xc6b   : > { %2759 = vpow2.f32 %v1829_v10 }
 0xc75   : > { %v2760_v11 = vpop.eup %2759 }
 0xc76   : > { %v1831_v12 = vsel %vm1137_vm4, %v2760_v11, 0.0 }
 0xc77   : > { %1832 = vadd.xlane.f32.xlu1 %v1831_v12 }
 0xd04   : > { %v1833_v14 = vpop.xlane.xlu1 %1832 }
 0xd05   : > { %2761 = vrcp.f32 %v1833_v14 }
 0xd0f   : > { %v2762_v15 = vpop.eup %2761 }
 0xd10   : > { %v1835_v16 = vmul.f32 %v2762_v15, %v2760_v11 }
 0xd12   : > { %v1836_v17 = vpack.c.bf16 %v1835_v16, %v1835_v16 }
 0xd14   : > { %2310 = vst.msk [vmem:[%s3672_s27 + $0xc] sm:$0xf] %vm1150_vm5, %v1836_v17  ;;  %2555 = vmatmul.mubr.msk.bf16.vlgmr.msra.gmra.mrb[44].mxu0 %vm1137_vm4, %v1836_v17 }
 0xde7   : > { %v1881_v19 = vpop.f32.mrb[44].mxu0 }
 0xde8   : > { %v1887_v20 = vpack.c.bf16 %v1881_v19, %v1881_v19  ;;  %v2556_v21 = vpop.f32.mrb[45].mxu0 }
 0xde9   : > { %v1884_v22 = vpop.f32.mrb[46].mxu0 }
 0xdea   : > { %v2557_v23 = vpop.f32.mrb[47].mxu0  ;;  %2563 = vmatmul.mubr.msk.bf16.vlgmr.msra.gmra.mrb[44].mxu1 %vm558_vm1, %v1887_v20 }
 0xebd   : > { %v1942_v24 = vpop.f32.mrb[44].mxu1 }
 0xebe   : > { %v1948_v25 = vadd.f32 %v1942_v24, %v1718_v59  ;;  %v2564_v26 = vpop.f32.mrb[45].mxu1 }
 0xebf   : > { %v1945_v27 = vpop.f32.mrb[46].mxu1 }
 0xec0   : > { %v1956_v28 = vadd.f32 %v2315_v0, %v1948_v25  ;;  %v2565_v29 = vpop.f32.mrb[47].mxu1 }
 0xec2   : > { %v1957_v30 = vadd.f32 %v1956_v28, %v3582_v3 }
 0xec4   : > { %v1958_v31 = vsel %vm558_vm1, %v1957_v30, 0.0 }
 0xec5   : > { %1959 = vadd.xlane.f32.xlu0 %v1958_v31 }
 0xf52   : > { %v1960_v32 = vpop.xlane.xlu0 %1959 }
 0xf53   : > { %v1962_v33 = vmul.f32 0.03125, %v1960_v32 }
 0xf55   : > { %v1963_v34 = vsub.f32 %v1957_v30, %v1962_v33 }
 0xf57   : > { %v1964_v35 = vmul.f32 %v1963_v34, %v1963_v34 }
 0xf59   : > { %v1965_v36 = vsel %vm558_vm1, %v1964_v35, 0.0 }
 0xf5a   : > { %1966 = vadd.xlane.f32.xlu1 %v1965_v36 }
 0xf5b   : > { %3034 = shalt.err (!%p3031_p10)
}
 0xf5c   : > { %s3035_s12 = scalar_lea.hbm %s3759_s20, 256  ;;  %s3039_s18 = scalar_lea.hbm %s3920_s25, 512 }
 0xf5d   : > { %p3036_p11 = scmp.ne.s32.totalorder %s3759_s20, %s3035_s12  ;;  %p3040_p7 = scmp.lt.u32.totalorder %s3759_s20, %s3920_s25 }
 0xf5e   : > { %p3041_p9 = scmp.lt.u32.totalorder %s3039_s18, %s3035_s12  ;;  %p3043_p2 = scmp.lt.u32.totalorder %s3035_s12, %s3759_s20 }
 0xf5f   : > { %p3037_p0 = pnand %p3036_p11, %p3921_p12 }
 0xf60   : > { %p3042_p8 = por %p3041_p9, %p3040_p7 }
 0xf61   : > { %p3038_p13 = pneg %p3037_p0 }
 0xf62   : > { %p3044_p1 = por %p3043_p2, %p3042_p8 }
 0xf64   : > { %p3045_p6 = pnand %p3044_p1, %p3038_p13 }
 0xf66   : > { %3048 = shalt.err (!%p3045_p6)
}
 0xf67   : > { %s3171_s19 = smov 64   ;;  %s3172_s27 = smov 4   ;;  %v2316_v40 = vld [vmem:[#allocation15] ss:$0 sm:$0xff]  ;;  %v2317_v42 = vld [vmem:[#allocation16] ss:$0 sm:$0xff] }
 0xf68   : > { %2599 = dma.vmem_to_hbm [thread:$0]  (%p3921_p12), %s3761_s29, 256, %s3759_s20, %s1995_s30, %s3171_s19, %s3171_s19, %s3172_s27  }
 0xf69   : > { %s2320_s28 = sshll.u32 %s3919_s21, 7  ;;  %s527_s23 = scalar_lea.vmem [#allocation19], %s2245_s2 }
 0xf6a   : > { %s2009_s9 = sshll.u32 %s527_s23, 4  ;;  %s3922_s15 = sld [smem:[#allocation41_spill]]  ;;  %s3795_s9 = int_to_ptr.vmem [resolvable:$true] %s2009_s9 }
 0xf6b   : > { %s1990_s20 = scalar_lea.sflag [#allocation6], %s3544_s0  ;;  %s3049_s30 = scalar_lea.vmem %s3795_s9, 128 }
 0xf6c   : > { %p3050_p5 = scmp.ne.s32.totalorder %s3795_s9, %s3049_s30  ;;  %s3173_s2 = smov [#allocation19]  }
 0xf6d   : > { %s3053_s21 = sshll.u32 %s3173_s2, 4  ;;  %s3054_s21 = int_to_ptr.vmem [resolvable:$false] %s3053_s21 }
 0xf6e   : > { %p3051_p4 = pnand %p3050_p5, %p3921_p12  ;;  %s3055_s12 = scalar_lea.vmem %s3054_s21, 256 }
 0xf6f   : > { %p3056_p10 = scmp.lt.s32.totalorder %s3795_s9, %s3054_s21  ;;  %p3057_p11 = scmp.lt.s32.totalorder %s3055_s12, %s3049_s30 }
 0xf70   : > { %s3923_s10 = smov %s3922_s15  ;;  %s3793_s29 = scalar_lea.hbm %s3922_s15, %s2320_s28 }
 0xf71   : > { %p3052_p3 = pneg %p3051_p4  ;;  %p3058_p0 = por %p3057_p11, %p3056_p10 }
 0xf73   : > { %p3059_p13 = pnand %p3058_p0, %p3052_p3 }
 0xfe7   : > { %v1967_v3 = vpop.xlane.xlu1 %1966 }
 0xfe8   : > { %v1968_v37 = vmul.f32 0.03125, %v1967_v3 }
 0xfea   : > { %v1969_v38 = vadd.f32 1e-05, %v1968_v37 }
 0xfec   : > { %2763 = vrsqrt.f32 %v1969_v38 }
 0xff6   : > { %v2764_v39 = vpop.eup %2763 }
 0xff7   : > { %v1971_v41 = vmul.f32 %v2764_v39, %v1963_v34 }
 0xff9   : > { %v1979_v43 = vmul.f32 %v2316_v40, %v1971_v41 }
 0xffb   : > { %v1987_v44 = vadd.f32 %v2317_v42, %v1979_v43 }
 0xffd   : > { %1988 = vst.msk [vmem:[%s527_s23] sm:$0xff] %vm558_vm1, %v1987_v44 }
 0xffe   : > { %3062 = shalt.err (!%p3059_p13)
}
 0xfff   : > { %s3063_s0 = scalar_lea.hbm %s3793_s29, 128  ;;  %s3067_s18 = scalar_lea.hbm %s3923_s10, 256 }
0x1000   : > { %p3064_p7 = scmp.ne.s32.totalorder %s3793_s29, %s3063_s0  ;;  %p3068_p2 = scmp.lt.u32.totalorder %s3793_s29, %s3923_s10 }
0x1001   : > { %p3069_p1 = scmp.lt.u32.totalorder %s3067_s18, %s3063_s0  ;;  %p3071_p5 = scmp.lt.u32.totalorder %s3063_s0, %s3793_s29 }
0x1002   : > { %p3065_p9 = pnand %p3064_p7, %p3921_p12 }
0x1003   : > { %p3070_p6 = por %p3069_p1, %p3068_p2 }
0x1004   : > { %p3066_p8 = pneg %p3065_p9 }
0x1005   : > { %p3072_p4 = por %p3071_p5, %p3070_p6 }
0x1007   : > { %p3073_p3 = pnand %p3072_p4, %p3066_p8 }
0x1009   : > { %3076 = shalt.err (!%p3073_p3)
}
0x100a   : > { %2598 = dma.vmem_to_hbm [thread:$0]  (%p3921_p12), %s3795_s9, 128, %s3793_s29, %s1990_s20  }
0x100b PF: > { %s3924_s19 = sld [smem:[#allocation32_spill]]  ;;  %s2038_s27 = sand.u32 1, %s3135_s13  }
0x100c   : > { %p3925_p10 = scmp.ne.s32.totalorder %s3898_s22, 0  ;;  %s2039_s28 = scalar_lea.sflag [#allocation6], %s2038_s27 }
0x1011   : > { %p3926_p11 = scmp.ge.s32.totalorder %s3924_s19, 2 }
0x1013   : > { %p2632_p0 = pnand %p3926_p11, %p3925_p10 }
0x1015   : > { %3126 = dma.done.wait (!%p2632_p0), %s2039_s28, 128  }
0x1016   : > { %3128 = vsyncadd (!%p2632_p0), %s2039_s28, 4294967168  ;;  %s2048_s23 = scalar_lea.sflag [#allocation21], %s2038_s27 }
0x1017   : > { %3130 = dma.done.wait (!%p2632_p0), %s2048_s23, 256  }
0x1018   : > { %3132 = vsyncadd (!%p2632_p0), %s2048_s23, 4294967040  ;;  %s34_s18 = sadd.s32 1, %s3924_s19   ;;  %s3927_s26 = sld [smem:[#allocation30_spill]] }
0x1019   : > { %p31_p13 = scmp.ge.s32.totalorder %s34_s18, 4   ;;  %s3928_s15 = sld [smem:[#allocation35_spill]] }
0x101a   : > { %s3929_s9 = sld [smem:[#allocation34_spill]]  ;;  %s3930_s13 = smov %s3139_s14 }
0x101b   : > { %s3932_s16 = smov %s3151_s17  ;;  %33 = sbr.rel (!%p31_p13) target bundleno = 20 (0x14), region = 189 }
0x101e   : > { %s3931_s14 = smov %s3927_s26 }
0x1020   : > { %s3933_s17 = smov %s3929_s9 }
0x1022   :  { %2053 = vsyncpa [#allocation5], 1 }
0x1023   :  { %2055 = vsyncpa [#allocation5 + $0x1], 1 }
0x1024   :  { %2056 = vsyncpa [#allocation8], 1 }
0x1025   :  { %2057 = vsyncpa [#allocation11], 1 }
0x1026   :  { %2058 = vsyncpa [#allocation14], 1 }
0x1027   :  { %2059 = vsyncpa [#allocation17], 1 }
0x1028   :  { %2060 = vsyncpa [#allocation6], 1 }
0x1029   :  { %2062 = vsyncpa [#allocation6 + $0x1], 1 }
0x102a   :  { %2063 = vsyncpa [#allocation21], 1 }
0x102b   :  { %2065 = vsyncpa [#allocation21 + $0x1], 1 }

</bundles_post_ra>
